<compile_context>
chip_gen: v7x
topology: tpu7x:2x2x1
jax: 0.10.0
libtpu: 0.0.40
codegen_flags: <defaults>
</compile_context>

<pallas_src>
import jax
import jax.numpy as jnp
from jax.experimental import pallas as pl
from jax.experimental.pallas import tpu as pltpu

BN_EPS = 1e-5
LANE = 128
SUBLANE = 8
TK_MAX = 4096          # K tile size when w1 has to be streamed


def _round_up(x, m):
    return ((x + m - 1) // m) * m


# -----------------------------------------------------------------------------
# Kernel
# -----------------------------------------------------------------------------
def head_kernel(x_ref, w1_ref, b1_ref, w2_ref, b2_ref, out_ref, acc_ref):
    """Grid = (batch tiles, K tiles).  acc += x @ w1; finalize at k == last."""
    k = pl.program_id(1)

    @pl.when(k == 0)
    def _():
        acc_ref[...] = jnp.zeros_like(acc_ref)

    # Dropout(p=0.75) is identity in eval mode; BatchNorm is folded into w/b.
    acc_ref[...] += jnp.dot(x_ref[...], w1_ref[...],
                            preferred_element_type=jnp.float32)

    @pl.when(k == pl.num_programs(1) - 1)
    def _():
        h = jnp.maximum(acc_ref[...] + b1_ref[...], 0.0)   # bias + ReLU in f32
        out = jnp.dot(h.astype(jnp.bfloat16), w2_ref[...],
                      preferred_element_type=jnp.float32)
        out_ref[...] = (out + b2_ref[...]).astype(out_ref.dtype)


# -----------------------------------------------------------------------------
# Parameter preparation (pure precompute, exact BN folding)
# -----------------------------------------------------------------------------
def fold_params(params):
    """Fold eval-mode BN1/BN2 into the Linear layers; pad out_f lane-dense."""
    s1 = params["bn1_gamma"] * jax.lax.rsqrt(params["bn1_var"] + BN_EPS)
    t1 = params["bn1_beta"] - params["bn1_mean"] * s1
    w1 = params["w1"] * s1.reshape(-1, 1)                  # (in_f, hidden)
    b1 = params["b1"] + t1 @ params["w1"]                  # (1, hidden)

    s2 = params["bn2_gamma"] * jax.lax.rsqrt(params["bn2_var"] + BN_EPS)
    t2 = params["bn2_beta"] - params["bn2_mean"] * s2
    w2 = params["w2"] * s2.reshape(-1, 1)                  # (hidden, out_f)
    b2 = params["b2"] + t2 @ params["w2"]                  # (1, out_f)

    out_f = w2.shape[1]
    out_pad = _round_up(out_f, LANE)
    if out_pad != out_f:                                   # lane-dense output
        w2 = jnp.pad(w2, ((0, 0), (0, out_pad - out_f)))
        b2 = jnp.pad(b2, ((0, 0), (0, out_pad - out_f)))

    return w1.astype(jnp.bfloat16), b1, w2.astype(jnp.bfloat16), b2, out_f


# -----------------------------------------------------------------------------
# Tiling / VMEM heuristics
# -----------------------------------------------------------------------------
def _vmem_cap_bytes():
    cap = 128 << 20
    try:
        cap = int(getattr(pltpu.get_tpu_info(), "vmem_capacity_bytes", cap))
    except Exception:
        pass
    # ~25% headroom for compiler-internal scratch: 48 MiB on v7x (64 MiB/TC),
    # 96 MiB on v5e/v6e (128 MiB).
    return (cap * 3) // 4


def _vmem_budget_bytes(tb, tk, nk, hidden, out_pad):
    x_bytes = 2 * tb * tk * 2                          # bf16 x tiles, 2 bufs
    w1_bytes = (1 if nk == 1 else 2) * tk * hidden * 2  # resident vs streamed
    const_bytes = hidden * 4 + hidden * out_pad * 2 + out_pad * 4  # b1, w2, b2
    out_bytes = 2 * tb * out_pad * 2                   # bf16 out tiles, 2 bufs
    acc_bytes = tb * hidden * 4                        # f32 accumulator
    return x_bytes + w1_bytes + const_bytes + out_bytes + acc_bytes + (2 << 20)


def _choose_tb(B, tb_max):
    if B <= SUBLANE:
        return B                   # single tiny tile, block == full batch dim
    # >= 2 batch grid steps keeps both v7x TensorCores busy ("parallel" axis).
    return min(tb_max, _round_up(pl.cdiv(B, 2), SUBLANE))


def _choose_tk(in_f, tb, hidden, out_pad, cap):
    if _vmem_budget_bytes(tb, in_f, 1, hidden, out_pad) <= cap:
        return in_f                # whole reduction resident, single K step
    tk = max((min(TK_MAX, in_f) // LANE) * LANE, LANE)
    while tk > LANE and _vmem_budget_bytes(tb, tk, 2, hidden, out_pad) > cap:
        tk -= LANE
    return tk


# -----------------------------------------------------------------------------
# Wrapper
# -----------------------------------------------------------------------------
def head_forward(x_nchw, params, *, tb=256):
    """Fused Head forward (eval mode).  x_nchw: (B, C, H, W)."""
    B = x_nchw.shape[0]
    x = x_nchw.reshape(B, -1).astype(jnp.bfloat16)     # Flatten + bf16 stream
    in_f = x.shape[1]

    w1, b1, w2, b2, out_f = fold_params(params)
    hidden = w1.shape[1]
    out_pad = w2.shape[1]

    cap = _vmem_cap_bytes()
    TB = _choose_tb(B, tb)
    TK = _choose_tk(in_f, TB, hidden, out_pad, cap)

    if TK < in_f:
        # Stream w1 over K; zero-pad K so every K block is exact (exact math:
        # zero x columns / zero w1 rows contribute nothing).
        in_f_pad = _round_up(in_f, TK)
        if in_f_pad != in_f:
            x = jnp.pad(x, ((0, 0), (0, in_f_pad - in_f)))
            w1 = jnp.pad(w1, ((0, in_f_pad - in_f), (0, 0)))
        nk = in_f_pad // TK
        w1_spec = pl.BlockSpec((TK, hidden), lambda i, k: (k, 0))
    else:
        nk = 1
        # Whole bf16 w1 resident in VMEM for the entire kernel (single copy).
        w1_spec = pl.BlockSpec(memory_space=pltpu.MemorySpace.VMEM)

    grid = (pl.cdiv(B, TB), nk)
    vmem_limit = int(min(max(_vmem_budget_bytes(TB, TK, nk, hidden, out_pad),
                             32 << 20), cap))

    resident = pl.BlockSpec(memory_space=pltpu.MemorySpace.VMEM)

    out = pl.pallas_call(
        head_kernel,
        grid=grid,
        in_specs=[
            pl.BlockSpec((TB, TK), lambda i, k: (i, k)),   # x tile (bf16)
            w1_spec,                                       # w1 (bf16)
            resident,                                      # b1 (f32, resident)
            resident,                                      # w2 (bf16, resident)
            resident,                                      # b2 (f32, resident)
        ],
        out_specs=pl.BlockSpec((TB, out_pad), lambda i, k: (i, 0)),
        out_shape=jax.ShapeDtypeStruct((B, out_pad), jnp.bfloat16),
        scratch_shapes=[pltpu.VMEM((TB, hidden), jnp.float32)],
        compiler_params=pltpu.CompilerParams(
            dimension_semantics=("parallel", "arbitrary"),
            vmem_limit_bytes=vmem_limit),
    )(x, w1, b1, w2, b2)

    # Slice lane padding; keep the module's f32 interface.
    return out[:, :out_f].astype(jnp.float32)


# -----------------------------------------------------------------------------
# Init + references
# -----------------------------------------------------------------------------
def init_params(key, in_f, out_f, hidden=512):
    """Deterministic init mirroring nn.Linear / nn.BatchNorm1d defaults."""
    k1, k2, k3, k4 = jax.random.split(key, 4)
    lim1 = 1.0 / jnp.sqrt(in_f)
    lim2 = 1.0 / jnp.sqrt(hidden)
    # Linear weights stored (in, out) so the kernel computes x @ W + b.
    w1 = jax.random.uniform(k1, (in_f, hidden), jnp.float32, -lim1, lim1)
    b1 = jax.random.uniform(k2, (1, hidden), jnp.float32, -lim1, lim1)
    w2 = jax.random.uniform(k3, (hidden, out_f), jnp.float32, -lim2, lim2)
    b2 = jax.random.uniform(k4, (1, out_f), jnp.float32, -lim2, lim2)
    return {
        # BatchNorm1d(in_f): gamma=1, beta=0, running_mean=0, running_var=1
        "bn1_gamma": jnp.ones((1, in_f), jnp.float32),
        "bn1_beta": jnp.zeros((1, in_f), jnp.float32),
        "bn1_mean": jnp.zeros((1, in_f), jnp.float32),
        "bn1_var": jnp.ones((1, in_f), jnp.float32),
        "w1": w1, "b1": b1,
        # BatchNorm1d(512)
        "bn2_gamma": jnp.ones((1, hidden), jnp.float32),
        "bn2_beta": jnp.zeros((1, hidden), jnp.float32),
        "bn2_mean": jnp.zeros((1, hidden), jnp.float32),
        "bn2_var": jnp.ones((1, hidden), jnp.float32),
        "w2": w2, "b2": b2,
    }


def head_reference_f32(x_nchw, params):
    """Pure-JAX f32 reference of the exact eval-mode PyTorch forward."""
    B = x_nchw.shape[0]
    x = x_nchw.reshape(B, -1)
    h = ((x - params["bn1_mean"]) / jnp.sqrt(params["bn1_var"] + BN_EPS)
         * params["bn1_gamma"] + params["bn1_beta"])
    h = h @ params["w1"] + params["b1"]
    h = jnp.maximum(h, 0.0)
    h = ((h - params["bn2_mean"]) / jnp.sqrt(params["bn2_var"] + BN_EPS)
         * params["bn2_gamma"] + params["bn2_beta"])
    return h @ params["w2"] + params["b2"]


def head_reference_matched(x_nchw, params):
    """Pure-JAX reference mirroring the kernel's bf16 inputs/output rounding."""
    B = x_nchw.shape[0]
    x = x_nchw.reshape(B, -1).astype(jnp.bfloat16)
    w1, b1, w2, b2, out_f = fold_params(params)
    h = jnp.dot(x, w1, preferred_element_type=jnp.float32)
    h = jnp.maximum(h + b1, 0.0)
    out = jnp.dot(h.astype(jnp.bfloat16), w2,
                  preferred_element_type=jnp.float32) + b2
    out = out.astype(jnp.bfloat16).astype(jnp.float32)
    return out[:, :out_f]


if __name__ == "__main__":
    key = jax.random.PRNGKey(0)
    k_x, k_p = jax.random.split(key)

    # Input consistent with Flatten(): NCHW -> (B, C*H*W); in_f = 4*16*16 = 1024.
    B, C, H, W = 2, 4, 16, 16
    in_f = C * H * W
    out_f = 16

    x = jax.random.normal(k_x, (B, C, H, W), jnp.float32)
    params = init_params(k_p, in_f, out_f)

    out = head_forward(x, params)
    out = jax.block_until_ready(out)
    assert out.shape == (B, out_f)

    # Tight check against a reference that uses the same bf16 rounding points.
    ref_m = head_reference_matched(x, params)
    assert jnp.allclose(out, ref_m, atol=2e-2, rtol=2e-2)

    # Sanity check against the full-precision eval-mode reference
    # (tolerance covers bf16 matmul operands + bf16 output slab).
    ref_f = head_reference_f32(x, params)
    assert jnp.allclose(out, ref_f, atol=5e-2, rtol=5e-2)

    print("KERNEL_OK")
</pallas_src>

<mosaic_0001>
module attributes {stable_mosaic.version = 11 : i64} {
  func.func @head_kernel(%arg0: i32, %arg1: i32, %arg2: memref<2x1024xbf16, #tpu.memory_space<vmem>>, %arg3: memref<1024x512xbf16, #tpu.memory_space<vmem>>, %arg4: memref<1x512xf32, #tpu.memory_space<vmem>>, %arg5: memref<512x128xbf16, #tpu.memory_space<vmem>>, %arg6: memref<1x128xf32, #tpu.memory_space<vmem>>, %arg7: memref<2x128xbf16, #tpu.memory_space<vmem>>, %arg8: memref<2x512xf32, #tpu.memory_space<vmem>>) attributes {dimension_semantics = [#tpu.dimension_semantics<parallel>, #tpu.dimension_semantics<arbitrary>], iteration_bounds = array<i64: 1, 1>, scalar_prefetch = 0 : i64, scratch_operands = 1 : i64, tpu.core_type = #tpu.core_type<tc>, window_params = [{transform_indices = @transform_0, window_bounds = array<i64: 2, 1024>}, {pipeline_mode = #tpu.pipeline_mode<synchronous>, transform_indices = @transform_1, window_bounds = array<i64: 1024, 512>}, {pipeline_mode = #tpu.pipeline_mode<synchronous>, transform_indices = @transform_2, window_bounds = array<i64: 1, 512>}, {pipeline_mode = #tpu.pipeline_mode<synchronous>, transform_indices = @transform_3, window_bounds = array<i64: 512, 128>}, {pipeline_mode = #tpu.pipeline_mode<synchronous>, transform_indices = @transform_4, window_bounds = array<i64: 1, 128>}, {transform_indices = @transform_5, window_bounds = array<i64: 2, 128>}]} {
    %c0_i32 = arith.constant 0 : i32
    %0 = arith.cmpi eq, %arg1, %c0_i32 : i32
    %1 = arith.extui %0 : i1 to i32
    %c0_i32_0 = arith.constant 0 : i32
    %2 = arith.cmpi ne, %1, %c0_i32_0 : i32
    scf.if %2 {
      %cst_10 = arith.constant 0.000000e+00 : f32
      %12 = vector.broadcast %cst_10 : f32 to vector<2x512xf32>
      %c0_11 = arith.constant 0 : index
      %c0_12 = arith.constant 0 : index
      %13 = vector.load %arg8[%c0_11, %c0_12] : memref<2x512xf32, #tpu.memory_space<vmem>>, vector<2x512xf32>
      tpu.vector_store %arg8[%c0_11, %c0_12], %12 {strides = array<i32>} : memref<2x512xf32, #tpu.memory_space<vmem>>, vector<2x512xf32>,
    } else {
    }
    %c0 = arith.constant 0 : index
    %c0_1 = arith.constant 0 : index
    %3 = vector.load %arg8[%c0, %c0_1] : memref<2x512xf32, #tpu.memory_space<vmem>>, vector<2x512xf32>
    %c0_2 = arith.constant 0 : index
    %c0_3 = arith.constant 0 : index
    %4 = vector.load %arg2[%c0_2, %c0_3] : memref<2x1024xbf16, #tpu.memory_space<vmem>>, vector<2x1024xbf16>
    %c0_4 = arith.constant 0 : index
    %c0_5 = arith.constant 0 : index
    %5 = vector.load %arg3[%c0_4, %c0_5] : memref<1024x512xbf16, #tpu.memory_space<vmem>>, vector<1024x512xbf16>
    %cst = arith.constant dense<0.000000e+00> : vector<2x512xf32>
    %6 = tpu.matmul %4, %5, %cst {dimension_numbers = #tpu.dot_dimension_numbers<[1], [0], [0], [1], [0, 0, 1, 1], [], []>} : vector<2x1024xbf16>, vector<1024x512xbf16>, vector<2x512xf32> -> vector<2x512xf32>
    %7 = arith.addf %3, %6 : vector<2x512xf32>
    %c0_6 = arith.constant 0 : index
    %c0_7 = arith.constant 0 : index
    %8 = vector.load %arg8[%c0_6, %c0_7] : memref<2x512xf32, #tpu.memory_space<vmem>>, vector<2x512xf32>
    tpu.vector_store %arg8[%c0_6, %c0_7], %7 {strides = array<i32>} : memref<2x512xf32, #tpu.memory_space<vmem>>, vector<2x512xf32>,
    %c0_i32_8 = arith.constant 0 : i32
    %9 = arith.cmpi eq, %arg1, %c0_i32_8 : i32
    %10 = arith.extui %9 : i1 to i32
    %c0_i32_9 = arith.constant 0 : i32
    %11 = arith.cmpi ne, %10, %c0_i32_9 : i32
    scf.if %11 {
      %c0_10 = arith.constant 0 : index
      %c0_11 = arith.constant 0 : index
      %12 = vector.load %arg8[%c0_10, %c0_11] : memref<2x512xf32, #tpu.memory_space<vmem>>, vector<2x512xf32>
      %c0_12 = arith.constant 0 : index
      %c0_13 = arith.constant 0 : index
      %13 = vector.load %arg4[%c0_12, %c0_13] : memref<1x512xf32, #tpu.memory_space<vmem>>, vector<1x512xf32>
      %14 = vector.broadcast %13 : vector<1x512xf32> to vector<2x512xf32>
      %15 = arith.addf %12, %14 : vector<2x512xf32>
      %cst_14 = arith.constant 0.000000e+00 : f32
      %16 = vector.broadcast %cst_14 : f32 to vector<2x512xf32>
      %17 = arith.maximumf %15, %16 : vector<2x512xf32>
      %18 = arith.truncf %17 : vector<2x512xf32> to vector<2x512xbf16>
      %c0_15 = arith.constant 0 : index
      %c0_16 = arith.constant 0 : index
      %19 = vector.load %arg5[%c0_15, %c0_16] : memref<512x128xbf16, #tpu.memory_space<vmem>>, vector<512x128xbf16>
      %cst_17 = arith.constant dense<0.000000e+00> : vector<2x128xf32>
      %20 = tpu.matmul %18, %19, %cst_17 {dimension_numbers = #tpu.dot_dimension_numbers<[1], [0], [0], [1], [0, 0, 1, 1], [], []>} : vector<2x512xbf16>, vector<512x128xbf16>, vector<2x128xf32> -> vector<2x128xf32>
      %c0_18 = arith.constant 0 : index
      %c0_19 = arith.constant 0 : index
      %21 = vector.load %arg6[%c0_18, %c0_19] : memref<1x128xf32, #tpu.memory_space<vmem>>, vector<1x128xf32>
      %22 = vector.broadcast %21 : vector<1x128xf32> to vector<2x128xf32>
      %23 = arith.addf %20, %22 : vector<2x128xf32>
      %24 = arith.truncf %23 : vector<2x128xf32> to vector<2x128xbf16>
      %c0_20 = arith.constant 0 : index
      %c0_21 = arith.constant 0 : index
      %25 = vector.load %arg7[%c0_20, %c0_21] : memref<2x128xbf16, #tpu.memory_space<vmem>>, vector<2x128xbf16>
      tpu.vector_store %arg7[%c0_20, %c0_21], %24 {strides = array<i32>} : memref<2x128xbf16, #tpu.memory_space<vmem>>, vector<2x128xbf16>,
    } else {
    }
    return
  }
  func.func @transform_0(%arg0: i32, %arg1: i32) -> (i32, i32) {
    %c0_i32 = arith.constant 0 : i32
    return %arg0, %arg1 : i32, i32
  }
  func.func @transform_1(%arg0: i32, %arg1: i32) -> (i32, i32) {
    %c0_i32 = arith.constant 0 : i32
    %c0_i32_0 = arith.constant 0 : i32
    %c0_i32_1 = arith.constant 0 : i32
    return %c0_i32, %c0_i32_0 : i32, i32
  }
  func.func @transform_2(%arg0: i32, %arg1: i32) -> (i32, i32) {
    %c0_i32 = arith.constant 0 : i32
    %c0_i32_0 = arith.constant 0 : i32
    %c0_i32_1 = arith.constant 0 : i32
    return %c0_i32, %c0_i32_0 : i32, i32
  }
  func.func @transform_3(%arg0: i32, %arg1: i32) -> (i32, i32) {
    %c0_i32 = arith.constant 0 : i32
    %c0_i32_0 = arith.constant 0 : i32
    %c0_i32_1 = arith.constant 0 : i32
    return %c0_i32, %c0_i32_0 : i32, i32
  }
  func.func @transform_4(%arg0: i32, %arg1: i32) -> (i32, i32) {
    %c0_i32 = arith.constant 0 : i32
    %c0_i32_0 = arith.constant 0 : i32
    %c0_i32_1 = arith.constant 0 : i32
    return %c0_i32, %c0_i32_0 : i32, i32
  }
  func.func @transform_5(%arg0: i32, %arg1: i32) -> (i32, i32) {
    %c0_i32 = arith.constant 0 : i32
    %c0_i32_0 = arith.constant 0 : i32
    return %arg0, %c0_i32 : i32, i32
  }
}

</mosaic_0001>

<bundles_post_ra>
// kernel: tpu_custom_call.1
= control target key start
LH: loop header
LB: loop body
LE: loop exit
PB: predicated region body
PF: predicated region fallthrough
CT: control target
= control target key end

     0   :  { %10 = vsyncpa [#allocation4], 0  ;;  %s3449_s0 = inlined_call_operand.hbm [shape: bf16[2,1024], index: 0, kind: input, shape index: {}]   ;;  %s3450_s1 = inlined_call_operand.hbm [shape: bf16[1024,512], index: 1, kind: input, shape index: {}]   ;;  %s3451_s2 = inlined_call_operand.vmem [shape: f32[1,512], index: 2, kind: input, shape index: {}]   ;;  %s3452_s3 = inlined_call_operand.hbm [shape: bf16[512,128], index: 3, kind: input, shape index: {}]   ;;  %s3453_s4 = inlined_call_operand.vmem [shape: f32[1,128], index: 4, kind: input, shape index: {}]   ;;  %s3454_s5 = inlined_call_operand.hbm [shape: bf16[2,128], index: 5, kind: output, shape index: {}]  }
   0x1   :  { %11 = vsyncpa [#allocation7], 0 }
   0x2   :  { %12 = vsyncpa [#allocation5], 0  ;;  %s3321_s18 = smov [#allocation6]   ;;  %s3227_s22 = scalar_lea.hbm %s3450_s1, 32768 }
   0x3   :  { %s28_s19 = sshll.u32 %s3321_s18, 4  ;;  %p3228_p0 = scmp.ne.s32.totalorder %s3450_s1, %s3227_s22  ;;  %s29_s19 = int_to_ptr.vmem [resolvable:$true] %s28_s19 }
   0x4   :  { %p3231_p1 = scmp.lt.u32.totalorder %s3227_s22, %s3450_s1 }
   0x6   :  { %p3233_p2 = pnand %p3231_p1, %p3228_p0 }
   0x8   :  { %3236 = shalt.err (!%p3233_p2)
}
   0x9   :  { %s3237_s27 = scalar_lea.vmem %s29_s19, 32768  ;;  %p3242_p4 = scmp.lt.s32.totalorder %s29_s19, %s29_s19 }
   0xa   :  { %p3238_p3 = scmp.ne.s32.totalorder %s29_s19, %s3237_s27  ;;  %p3243_p5 = scmp.lt.s32.totalorder %s3237_s27, %s3237_s27 }
   0xc   :  { %p3244_p6 = por %p3243_p5, %p3242_p4 }
   0xe   :  { %p3245_p7 = pnand %p3244_p6, %p3238_p3 }
  0x10   :  { %3248 = shalt.err (!%p3245_p7)
}
  0x11   :  { %s3322_s28 = smov 256   ;;  %s3323_s29 = smov 16  }
  0x12   :  { %34 = dma.hbm_to_vmem [thread:$0]  %s3450_s1, 32768, %s29_s19, [#allocation7], %s3322_s28, %s3322_s28, %s3323_s29  }
  0x13   :  { %s3324_s7 = smov [#allocation3]   ;;  %s3325_s9 = smov [#allocation8]  }
  0x14   :  { %s19_s8 = sshll.u32 %s3324_s7, 4  ;;  %s42_s10 = sshll.u32 %s3325_s9, 4  ;;  %s20_s8 = int_to_ptr.vmem [resolvable:$true] %s19_s8  ;;  %s43_s10 = int_to_ptr.vmem [resolvable:$true] %s42_s10 }
  0x15   :  { %s3249_s13 = scalar_lea.hbm %s3449_s0, 128 }
  0x16   :  { %p3250_p8 = scmp.ne.s32.totalorder %s3449_s0, %s3249_s13  ;;  %p3253_p9 = scmp.lt.u32.totalorder %s3249_s13, %s3449_s0 }
  0x18   :  { %p3255_p10 = pnand %p3253_p9, %p3250_p8 }
  0x1a   :  { %3258 = shalt.err (!%p3255_p10)
}
  0x1b   :  { %s3259_s1 = scalar_lea.vmem %s20_s8, 128  ;;  %p3264_p12 = scmp.lt.s32.totalorder %s20_s8, %s20_s8 }
  0x1c   :  { %p3260_p11 = scmp.ne.s32.totalorder %s20_s8, %s3259_s1  ;;  %p3265_p13 = scmp.lt.s32.totalorder %s3259_s1, %s3259_s1 }
  0x1e   :  { %p3266_p0 = por %p3265_p13, %p3264_p12 }
  0x20   :  { %p3267_p1 = pnand %p3266_p0, %p3260_p11 }
  0x22   :  { %3270 = shalt.err (!%p3267_p1)
}
  0x23   :  { %22 = dma.hbm_to_vmem [thread:$0]  %s3449_s0, 128, %s20_s8, [#allocation4]  }
  0x24   :  { %s3271_s22 = scalar_lea.hbm %s3452_s3, 4096 }
  0x25   :  { %p3272_p2 = scmp.ne.s32.totalorder %s3452_s3, %s3271_s22  ;;  %p3275_p3 = scmp.lt.u32.totalorder %s3271_s22, %s3452_s3 }
  0x27   :  { %p3277_p4 = pnand %p3275_p3, %p3272_p2 }
  0x29   :  { %3280 = shalt.err (!%p3277_p4)
}
  0x2a   :  { %s3281_s27 = scalar_lea.vmem %s43_s10, 4096  ;;  %p3286_p6 = scmp.lt.s32.totalorder %s43_s10, %s43_s10 }
  0x2b   :  { %p3282_p5 = scmp.ne.s32.totalorder %s43_s10, %s3281_s27  ;;  %p3287_p7 = scmp.lt.s32.totalorder %s3281_s27, %s3281_s27 }
  0x2d   :  { %p3288_p8 = por %p3287_p7, %p3286_p6 }
  0x2f   :  { %p3289_p9 = pnand %p3288_p8, %p3282_p5 }
  0x31   :  { %3292 = shalt.err (!%p3289_p9)
}
  0x32   :  { %s3326_s0 = smov 64   ;;  %s3327_s28 = smov 4  }
  0x33   :  { %48 = dma.hbm_to_vmem [thread:$0]  %s3452_s3, 4096, %s43_s10, [#allocation7], %s3326_s0, %s3326_s0, %s3327_s28  }
  0x34   :  { %3315 = dma.done.wait [#allocation4], 128  }
  0x35   :  { %3316 = vsyncadd [#allocation4], 4294967168 }
  0x36   :  { %3317 = dma.done.wait [#allocation7], 36864  }
  0x37   :  { %3318 = vsyncadd [#allocation7], 4294930432  ;;  %v2810_v0 = vld [vmem:[#allocation6 + $0x4] ss:$16 sps:$4 sm:$0xff]   ;;  %v2812_v1 = vld [vmem:[#allocation6 + $0xc] ss:$16 sps:$4 sm:$0xff]   ;;  %v329_v38 = vlaneseq }
  0x38   :  { %1662 = vmatprep.subr.bf16.mxu0 %v2810_v0  ;;  %v2814_v2 = vld [vmem:[#allocation6] ss:$16 sps:$4 sm:$0xff]   ;;  %v2815_v3 = vld [vmem:[#allocation6 + $0x8] ss:$16 sps:$4 sm:$0xff]   ;;  %1826 = vmatprep.subr.bf16.mxu1 %v2812_v1  ;;  %v2816_v4 = vld [vmem:[#allocation6 + $0x24] ss:$16 sps:$4 sm:$0xff]  }
  0x39   :  { %1663 = vmatpush1.bf16.msra.mxu0 %v2814_v2  ;;  %1827 = vmatpush1.bf16.msra.mxu1 %v2815_v3  ;;  %v2818_v5 = vld [vmem:[#allocation6 + $0x2c] ss:$16 sps:$4 sm:$0xff]   ;;  %v2820_v6 = vld [vmem:[#allocation6 + $0x20] ss:$16 sps:$4 sm:$0xff]   ;;  %v2821_v7 = vld [vmem:[#allocation6 + $0x28] ss:$16 sps:$4 sm:$0xff]  }
  0x3a   :  { %1664 = vmatprep.subr.bf16.mxu0 %v2816_v4  ;;  %1828 = vmatprep.subr.bf16.mxu1 %v2818_v5  ;;  %v2822_v8 = vld [vmem:[#allocation6 + $0x44] ss:$16 sps:$4 sm:$0xff]   ;;  %v2824_v9 = vld [vmem:[#allocation6 + $0x4c] ss:$16 sps:$4 sm:$0xff]   ;;  %v2826_v10 = vld [vmem:[#allocation6 + $0x40] ss:$16 sps:$4 sm:$0xff]  }
  0x3b   :  { %v2827_v11 = vld [vmem:[#allocation6 + $0x48] ss:$16 sps:$4 sm:$0xff]   ;;  %v2828_v12 = vld [vmem:[#allocation6 + $0x64] ss:$16 sps:$4 sm:$0xff]   ;;  %v2830_v13 = vld [vmem:[#allocation6 + $0x6c] ss:$16 sps:$4 sm:$0xff]  }
  0x3c   :  { %v2832_v14 = vld [vmem:[#allocation6 + $0x60] ss:$16 sps:$4 sm:$0xff]   ;;  %v2833_v15 = vld [vmem:[#allocation6 + $0x68] ss:$16 sps:$4 sm:$0xff]   ;;  %v2834_v16 = vld [vmem:[#allocation6 + $0x84] ss:$16 sps:$4 sm:$0xff]  }
  0x3d   :  { %1665 = vmatpush1.bf16.msra.mxu0 %v2820_v6  ;;  %1829 = vmatpush1.bf16.msra.mxu1 %v2821_v7  ;;  %v2836_v17 = vld [vmem:[#allocation6 + $0x8c] ss:$16 sps:$4 sm:$0xff]   ;;  %v2838_v18 = vld [vmem:[#allocation6 + $0x80] ss:$16 sps:$4 sm:$0xff]   ;;  %v2839_v19 = vld [vmem:[#allocation6 + $0x88] ss:$16 sps:$4 sm:$0xff]  }
  0x3e   :  { %1666 = vmatprep.subr.bf16.mxu0 %v2822_v8  ;;  %1830 = vmatprep.subr.bf16.mxu1 %v2824_v9  ;;  %v2840_v20 = vld [vmem:[#allocation6 + $0xa4] ss:$16 sps:$4 sm:$0xff]   ;;  %v2842_v21 = vld [vmem:[#allocation6 + $0xac] ss:$16 sps:$4 sm:$0xff]   ;;  %v2844_v22 = vld [vmem:[#allocation6 + $0xa0] ss:$16 sps:$4 sm:$0xff]  }
  0x3f   :  { %v2845_v23 = vld [vmem:[#allocation6 + $0xa8] ss:$16 sps:$4 sm:$0xff]   ;;  %v2846_v24 = vld [vmem:[#allocation6 + $0xc4] ss:$16 sps:$4 sm:$0xff]   ;;  %v2848_v25 = vld [vmem:[#allocation6 + $0xcc] ss:$16 sps:$4 sm:$0xff]  }
  0x40   :  { %v2850_v26 = vld [vmem:[#allocation6 + $0xc0] ss:$16 sps:$4 sm:$0xff]   ;;  %v2851_v27 = vld [vmem:[#allocation6 + $0xc8] ss:$16 sps:$4 sm:$0xff]   ;;  %v2852_v28 = vld [vmem:[#allocation6 + $0xe4] ss:$16 sps:$4 sm:$0xff]  }
  0x41   :  { %1667 = vmatpush1.bf16.msra.mxu0 %v2826_v10  ;;  %1831 = vmatpush1.bf16.msra.mxu1 %v2827_v11  ;;  %v2854_v29 = vld [vmem:[#allocation6 + $0xec] ss:$16 sps:$4 sm:$0xff]   ;;  %v2856_v30 = vld [vmem:[#allocation6 + $0xe0] ss:$16 sps:$4 sm:$0xff]   ;;  %v2857_v31 = vld [vmem:[#allocation6 + $0xe8] ss:$16 sps:$4 sm:$0xff]  }
  0x42   :  { %1668 = vmatprep.subr.bf16.mxu0 %v2828_v12  ;;  %1832 = vmatprep.subr.bf16.mxu1 %v2830_v13  ;;  %v2858_v32 = vld [vmem:[#allocation6 + $0x104] ss:$16 sps:$4 sm:$0xff]   ;;  %v2860_v33 = vld [vmem:[#allocation6 + $0x10c] ss:$16 sps:$4 sm:$0xff]   ;;  %v2862_v34 = vld [vmem:[#allocation6 + $0x100] ss:$16 sps:$4 sm:$0xff]  }
  0x43   :  { %v2863_v35 = vld [vmem:[#allocation6 + $0x108] ss:$16 sps:$4 sm:$0xff]   ;;  %v3328_v36 = vmov 1966171168   ;;  %v2864_v39 = vld [vmem:[#allocation6 + $0x124] ss:$16 sps:$4 sm:$0xff]  }
  0x44   :  { %v327_v37 = vunpack.c.l.s4 %v3328_v36  ;;  %v2866_v40 = vld [vmem:[#allocation6 + $0x12c] ss:$16 sps:$4 sm:$0xff]   ;;  %v2868_v41 = vld [vmem:[#allocation6 + $0x120] ss:$16 sps:$4 sm:$0xff]   ;;  %v3397_v43 = vshrl.u32 %v329_v38, 7  ;;  %s3330_s8 = smov [#allocation9]  }
  0x45   :  { %1669 = vmatpush1.bf16.msra.mxu0 %v2832_v14  ;;  %1833 = vmatpush1.bf16.msra.mxu1 %v2833_v15  ;;  %v2869_v44 = vld [vmem:[#allocation6 + $0x128] ss:$16 sps:$4 sm:$0xff]   ;;  %v2870_v45 = vld [vmem:[#allocation6 + $0x144] ss:$16 sps:$4 sm:$0xff]   ;;  %v2872_v46 = vld [vmem:[#allocation6 + $0x14c] ss:$16 sps:$4 sm:$0xff]  }
  0x46   :  { %1670 = vmatprep.subr.bf16.mxu0 %v2834_v16  ;;  %1834 = vmatprep.subr.bf16.mxu1 %v2836_v17  ;;  %v328_v42 = vunpack.c.0.s8 %v327_v37  ;;  %v2874_v47 = vld [vmem:[#allocation6 + $0x140] ss:$16 sps:$4 sm:$0xff]   ;;  %v2875_v48 = vld [vmem:[#allocation6 + $0x148] ss:$16 sps:$4 sm:$0xff]   ;;  %v2876_v50 = vld [vmem:[#allocation6 + $0x164] ss:$16 sps:$4 sm:$0xff]  }
  0x47   :  { %v2878_v51 = vld [vmem:[#allocation6 + $0x16c] ss:$16 sps:$4 sm:$0xff]   ;;  %v2880_v53 = vld [vmem:[#allocation6 + $0x160] ss:$16 sps:$4 sm:$0xff]   ;;  %v2881_v55 = vld [vmem:[#allocation6 + $0x168] ss:$16 sps:$4 sm:$0xff]  }
  0x48   :  { %v3400_v49 = vsub.s32 %v328_v42, %v3397_v43  ;;  %v67_v52 = vld [vmem:[#allocation3] sm:$0xff]  ;;  %v2882_v56 = vld [vmem:[#allocation6 + $0x184] ss:$16 sps:$4 sm:$0xff]   ;;  %v2886_v59 = vld [vmem:[#allocation6 + $0x180] ss:$16 sps:$4 sm:$0xff]   ;;  %s2433_s9 = sshll.u32 %s3330_s8, 4  ;;  %s2434_s9 = int_to_ptr.vmem [resolvable:$true] %s2433_s9 }
  0x49   :  { %1671 = vmatpush1.bf16.msra.mxu0 %v2838_v18  ;;  %1835 = vmatpush1.bf16.msra.mxu1 %v2839_v19  ;;  %v2884_v57 = vld [vmem:[#allocation6 + $0x18c] ss:$16 sps:$4 sm:$0xff]   ;;  %v2887_v61 = vld [vmem:[#allocation6 + $0x188] ss:$16 sps:$4 sm:$0xff]   ;;  %v2888_v62 = vld [vmem:[#allocation6 + $0x1a4] ss:$16 sps:$4 sm:$0xff]   ;;  %v325_v9 = vcombine.high %v67_v52, %v67_v52  ;;  %p3298_p11 = scmp.lt.s32.totalorder %s2434_s9, %s2434_s9 }
  0x4a   :  { %1672 = vmatprep.subr.bf16.mxu0 %v2840_v20  ;;  %1836 = vmatprep.subr.bf16.mxu1 %v2842_v21  ;;  %v332_v54 = vrot.slane %v67_v52, %v3400_v49  ;;  %v2890_v63 = vld [vmem:[#allocation6 + $0x1ac] ss:$16 sps:$4 sm:$0xff]   ;;  %v2892_v0 = vld [vmem:[#allocation6 + $0x1a0] ss:$16 sps:$4 sm:$0xff]   ;;  %v2893_v1 = vld [vmem:[#allocation6 + $0x1a8] ss:$16 sps:$4 sm:$0xff]  }
  0x4b   :  { %v2894_v2 = vld [vmem:[#allocation6 + $0x1c4] ss:$16 sps:$4 sm:$0xff]   ;;  %v2896_v3 = vld [vmem:[#allocation6 + $0x1cc] ss:$16 sps:$4 sm:$0xff]   ;;  %v2898_v4 = vld [vmem:[#allocation6 + $0x1c0] ss:$16 sps:$4 sm:$0xff]   ;;  %v339_v13 = vrot.slane %v325_v9, %v3400_v49 }
  0x4c   :  { %v340_v58 = vcombine.high %v332_v54, %v332_v54  ;;  %v2899_v5 = vld [vmem:[#allocation6 + $0x1c8] ss:$16 sps:$4 sm:$0xff]   ;;  %v2900_v6 = vld [vmem:[#allocation6 + $0x1e4] ss:$16 sps:$4 sm:$0xff]   ;;  %v2902_v7 = vld [vmem:[#allocation6 + $0x1ec] ss:$16 sps:$4 sm:$0xff]   ;;  %v3406_v15 = vrot.slane %v332_v54, %v3400_v49 }
  0x4d   :  { %1673 = vmatpush1.bf16.msra.mxu0 %v2844_v22  ;;  %1837 = vmatpush1.bf16.msra.mxu1 %v2845_v23  ;;  %v2904_v8 = vld [vmem:[#allocation6 + $0x1e0] ss:$16 sps:$4 sm:$0xff]   ;;  %v2905_v10 = vld [vmem:[#allocation6 + $0x1e8] ss:$16 sps:$4 sm:$0xff]   ;;  %v2908_v11 = vld [vmem:[#allocation6 + $0x204] ss:$16 sps:$4 sm:$0xff]   ;;  %v341_v16 = vcombine.high %v339_v13, %v339_v13  ;;  %v3412_v21 = vrot.slane %v339_v13, %v3400_v49 }
  0x4e   :  { %1674 = vmatprep.subr.bf16.mxu0 %v2846_v24  ;;  %1838 = vmatprep.subr.bf16.mxu1 %v2848_v25  ;;  %v362_v60 = vrot.slane %v340_v58, %v3400_v49  ;;  %v2911_v12 = vld [vmem:[#allocation6 + $0x20c] ss:$16 sps:$4 sm:$0xff]   ;;  %v2906_v14 = vld [vmem:[#allocation6 + $0x200] ss:$16 sps:$4 sm:$0xff]   ;;  %v2909_v17 = vld [vmem:[#allocation6 + $0x208] ss:$16 sps:$4 sm:$0xff]  }
  0x4f   :  { %v2914_v18 = vld [vmem:[#allocation6 + $0x224] ss:$16 sps:$4 sm:$0xff]   ;;  %v2917_v19 = vld [vmem:[#allocation6 + $0x22c] ss:$16 sps:$4 sm:$0xff]   ;;  %v3409_v20 = vrot.slane %v341_v16, %v3400_v49  ;;  %v2912_v23 = vld [vmem:[#allocation6 + $0x220] ss:$16 sps:$4 sm:$0xff]  }
  0x50   :  { %1694 = vmatprep.mubr.bf16.mxu0 %v362_v60  ;;  %1858 = vmatprep.mubr.bf16.mxu1 %v362_v60  ;;  %v372_v22 = vcombine.high %v362_v60, %v362_v60  ;;  %v2915_v24 = vld [vmem:[#allocation6 + $0x228] ss:$16 sps:$4 sm:$0xff]   ;;  %v2920_v25 = vld [vmem:[#allocation6 + $0x244] ss:$16 sps:$4 sm:$0xff]   ;;  %v2941_v38 = vld [vmem:[#allocation6 + $0x2ac] ss:$16 sps:$4 sm:$0xff]  }
  0x51   :  { %1675 = vmatpush1.bf16.msra.mxu0 %v2850_v26  ;;  %1839 = vmatpush1.bf16.msra.mxu1 %v2851_v27  ;;  %v2923_v26 = vld [vmem:[#allocation6 + $0x24c] ss:$16 sps:$4 sm:$0xff]   ;;  %v2918_v27 = vld [vmem:[#allocation6 + $0x240] ss:$16 sps:$4 sm:$0xff]   ;;  %v2933_v36 = vld [vmem:[#allocation6 + $0x288] ss:$16 sps:$4 sm:$0xff]  }
  0x52   :  { %1676 = vmatprep.subr.bf16.mxu0 %v2852_v28  ;;  %1840 = vmatprep.subr.bf16.mxu1 %v2854_v29  ;;  %v2921_v28 = vld [vmem:[#allocation6 + $0x248] ss:$16 sps:$4 sm:$0xff]   ;;  %v2926_v29 = vld [vmem:[#allocation6 + $0x264] ss:$16 sps:$4 sm:$0xff]   ;;  %v2947_v42 = vld [vmem:[#allocation6 + $0x2cc] ss:$16 sps:$4 sm:$0xff]  }
  0x53   :  { %v2938_v37 = vld [vmem:[#allocation6 + $0x2a4] ss:$16 sps:$4 sm:$0xff]   ;;  %v2951_v49 = vld [vmem:[#allocation6 + $0x2e8] ss:$16 sps:$4 sm:$0xff]   ;;  %v2954_v52 = vld [vmem:[#allocation6 + $0x300] ss:$16 sps:$4 sm:$0xff]  }
  0x54   :  { %v2962_v54 = vld [vmem:[#allocation6 + $0x324] ss:$16 sps:$4 sm:$0xff]   ;;  %v2966_v60 = vld [vmem:[#allocation6 + $0x340] ss:$16 sps:$4 sm:$0xff]   ;;  %v2987_v9 = vld [vmem:[#allocation6 + $0x3a8] ss:$16 sps:$4 sm:$0xff]  }
  0x55   :  { %1677 = vmatpush1.bf16.msra.mxu0 %v2856_v30  ;;  %1841 = vmatpush1.bf16.msra.mxu1 %v2857_v31  ;;  %v2929_v30 = vld [vmem:[#allocation6 + $0x26c] ss:$16 sps:$4 sm:$0xff]   ;;  %v2924_v31 = vld [vmem:[#allocation6 + $0x260] ss:$16 sps:$4 sm:$0xff]   ;;  %v2968_v58 = vld [vmem:[#allocation6 + $0x344] ss:$16 sps:$4 sm:$0xff]  }
  0x56   :  { %1678 = vmatprep.subr.bf16.mxu0 %v2858_v32  ;;  %1842 = vmatprep.subr.bf16.mxu1 %v2860_v33  ;;  %v2927_v32 = vld [vmem:[#allocation6 + $0x268] ss:$16 sps:$4 sm:$0xff]   ;;  %v2932_v33 = vld [vmem:[#allocation6 + $0x284] ss:$16 sps:$4 sm:$0xff]   ;;  %v3001_v16 = vld [vmem:[#allocation6 + $0x3ec] ss:$16 sps:$4 sm:$0xff]  }
  0x57   :  { %v2993_v13 = vld [vmem:[#allocation6 + $0x3c8] ss:$16 sps:$4 sm:$0xff]   ;;  %s3293_s10 = scalar_lea.vmem %s2434_s9, 16  ;;  %s3297_s11 = scalar_lea.vmem %s2434_s9, 32 }
  0x58   :  { %p3294_p10 = scmp.ne.s32.totalorder %s2434_s9, %s3293_s10  ;;  %p3299_p12 = scmp.lt.s32.totalorder %s3297_s11, %s3293_s10 }
  0x59   :  { %1679 = vmatpush1.bf16.msra.mxu0 %v2862_v34  ;;  %1843 = vmatpush1.bf16.msra.mxu1 %v2863_v35  ;;  %v2935_v34 = vld [vmem:[#allocation6 + $0x28c] ss:$16 sps:$4 sm:$0xff]   ;;  %v2930_v35 = vld [vmem:[#allocation6 + $0x280] ss:$16 sps:$4 sm:$0xff]  }
  0x5a   :  { %1680 = vmatprep.subr.bf16.mxu0 %v2864_v39  ;;  %1844 = vmatprep.subr.bf16.mxu1 %v2866_v40  ;;  %v2936_v39 = vld [vmem:[#allocation6 + $0x2a0] ss:$16 sps:$4 sm:$0xff]   ;;  %v2939_v40 = vld [vmem:[#allocation6 + $0x2a8] ss:$16 sps:$4 sm:$0xff]   ;;  %p3300_p13 = por %p3299_p12, %p3298_p11 }
  0x5c   :  { %p3301_p0 = pnand %p3300_p13, %p3294_p10 }
  0x5d   :  { %1681 = vmatpush1.bf16.msra.mxu0 %v2868_v41  ;;  %1845 = vmatpush1.bf16.msra.mxu1 %v2869_v44  ;;  %v2944_v41 = vld [vmem:[#allocation6 + $0x2c4] ss:$16 sps:$4 sm:$0xff]   ;;  %v2942_v44 = vld [vmem:[#allocation6 + $0x2c0] ss:$16 sps:$4 sm:$0xff]  }
  0x5e   :  { %1682 = vmatprep.subr.bf16.mxu0 %v2870_v45  ;;  %1846 = vmatprep.subr.bf16.mxu1 %v2872_v46  ;;  %v2945_v45 = vld [vmem:[#allocation6 + $0x2c8] ss:$16 sps:$4 sm:$0xff]   ;;  %v2950_v46 = vld [vmem:[#allocation6 + $0x2e4] ss:$16 sps:$4 sm:$0xff]  }
  0x61   :  { %1683 = vmatpush1.bf16.msra.mxu0 %v2874_v47  ;;  %1847 = vmatpush1.bf16.msra.mxu1 %v2875_v48  ;;  %v2953_v47 = vld [vmem:[#allocation6 + $0x2ec] ss:$16 sps:$4 sm:$0xff]   ;;  %v2948_v48 = vld [vmem:[#allocation6 + $0x2e0] ss:$16 sps:$4 sm:$0xff]  }
  0x62   :  { %1684 = vmatprep.subr.bf16.mxu0 %v2876_v50  ;;  %1848 = vmatprep.subr.bf16.mxu1 %v2878_v51  ;;  %v2956_v50 = vld [vmem:[#allocation6 + $0x304] ss:$16 sps:$4 sm:$0xff]   ;;  %v2959_v51 = vld [vmem:[#allocation6 + $0x30c] ss:$16 sps:$4 sm:$0xff]  }
  0x65   :  { %1685 = vmatpush1.bf16.msra.mxu0 %v2880_v53  ;;  %1849 = vmatpush1.bf16.msra.mxu1 %v2881_v55  ;;  %v2957_v53 = vld [vmem:[#allocation6 + $0x308] ss:$16 sps:$4 sm:$0xff]   ;;  %v2965_v55 = vld [vmem:[#allocation6 + $0x32c] ss:$16 sps:$4 sm:$0xff]  }
  0x66   :  { %1686 = vmatprep.subr.bf16.mxu0 %v2882_v56  ;;  %1850 = vmatprep.subr.bf16.mxu1 %v2884_v57  ;;  %v2960_v56 = vld [vmem:[#allocation6 + $0x320] ss:$16 sps:$4 sm:$0xff]   ;;  %v2963_v57 = vld [vmem:[#allocation6 + $0x328] ss:$16 sps:$4 sm:$0xff]  }
  0x69   :  { %1687 = vmatpush1.bf16.msra.mxu0 %v2886_v59  ;;  %1851 = vmatpush1.bf16.msra.mxu1 %v2887_v61  ;;  %v2971_v59 = vld [vmem:[#allocation6 + $0x34c] ss:$16 sps:$4 sm:$0xff]   ;;  %v2969_v61 = vld [vmem:[#allocation6 + $0x348] ss:$16 sps:$4 sm:$0xff]  }
  0x6a   :  { %1688 = vmatprep.subr.bf16.mxu0 %v2888_v62  ;;  %1852 = vmatprep.subr.bf16.mxu1 %v2890_v63  ;;  %v2974_v62 = vld [vmem:[#allocation6 + $0x364] ss:$16 sps:$4 sm:$0xff]   ;;  %v2977_v63 = vld [vmem:[#allocation6 + $0x36c] ss:$16 sps:$4 sm:$0xff]  }
  0x6d   :  { %1689 = vmatpush1.bf16.msra.mxu0 %v2892_v0  ;;  %1853 = vmatpush1.bf16.msra.mxu1 %v2893_v1  ;;  %v2972_v0 = vld [vmem:[#allocation6 + $0x360] ss:$16 sps:$4 sm:$0xff]   ;;  %v2975_v1 = vld [vmem:[#allocation6 + $0x368] ss:$16 sps:$4 sm:$0xff]  }
  0x6e   :  { %1690 = vmatprep.subr.bf16.mxu0 %v2894_v2  ;;  %1854 = vmatprep.subr.bf16.mxu1 %v2896_v3  ;;  %v2980_v2 = vld [vmem:[#allocation6 + $0x384] ss:$16 sps:$4 sm:$0xff]   ;;  %v2983_v3 = vld [vmem:[#allocation6 + $0x38c] ss:$16 sps:$4 sm:$0xff]  }
  0x71   :  { %1691 = vmatpush1.bf16.msra.mxu0 %v2898_v4  ;;  %1855 = vmatpush1.bf16.msra.mxu1 %v2899_v5  ;;  %v2978_v4 = vld [vmem:[#allocation6 + $0x380] ss:$16 sps:$4 sm:$0xff]   ;;  %v2981_v5 = vld [vmem:[#allocation6 + $0x388] ss:$16 sps:$4 sm:$0xff]  }
  0x72   :  { %1692 = vmatprep.subr.bf16.mxu0 %v2900_v6  ;;  %1856 = vmatprep.subr.bf16.mxu1 %v2902_v7  ;;  %v2986_v6 = vld [vmem:[#allocation6 + $0x3a4] ss:$16 sps:$4 sm:$0xff]   ;;  %v2989_v7 = vld [vmem:[#allocation6 + $0x3ac] ss:$16 sps:$4 sm:$0xff]  }
  0x75   :  { %1693 = vmatpush1.bf16.msra.mxu0 %v2904_v8  ;;  %1857 = vmatpush1.bf16.msra.mxu1 %v2905_v10  ;;  %v2984_v8 = vld [vmem:[#allocation6 + $0x3a0] ss:$16 sps:$4 sm:$0xff]   ;;  %v2992_v10 = vld [vmem:[#allocation6 + $0x3c4] ss:$16 sps:$4 sm:$0xff]  }
  0x76   :  { %1703 = vmatprep.subr.bf16.mxu0 %v2908_v11  ;;  %1867 = vmatprep.subr.bf16.mxu1 %v2911_v12  ;;  %v2995_v11 = vld [vmem:[#allocation6 + $0x3cc] ss:$16 sps:$4 sm:$0xff]   ;;  %v2990_v12 = vld [vmem:[#allocation6 + $0x3c0] ss:$16 sps:$4 sm:$0xff]  }
  0x78   :  { %1695 = vmatmul.mubr.bf16.vlgmr.msra.gmra.mrb[0].mxu0 %v3406_v15  ;;  %1859 = vmatmul.mubr.bf16.vlgmr.msra.gmra.mrb[0].mxu1 %v3406_v15 }
  0x79   :  { %1704 = vmatpush1.bf16.msra.mxu0 %v2906_v14  ;;  %1868 = vmatpush1.bf16.msra.mxu1 %v2909_v17  ;;  %v2998_v14 = vld [vmem:[#allocation6 + $0x3e4] ss:$16 sps:$4 sm:$0xff]   ;;  %v2996_v17 = vld [vmem:[#allocation6 + $0x3e0] ss:$16 sps:$4 sm:$0xff]  }
  0x7a   :  { %1705 = vmatprep.subr.bf16.mxu0 %v2914_v18  ;;  %1869 = vmatprep.subr.bf16.mxu1 %v2917_v19  ;;  %v2999_v18 = vld [vmem:[#allocation6 + $0x3e8] ss:$16 sps:$4 sm:$0xff]   ;;  %v3004_v19 = vld [vmem:[#allocation6 + $0x404] ss:$16 sps:$4 sm:$0xff]  }
  0x7b   :  { %1735 = vmatprep.mubr.bf16.mxu0 %v372_v22  ;;  %1899 = vmatprep.mubr.bf16.mxu1 %v372_v22  ;;  %v3007_v22 = vld [vmem:[#allocation6 + $0x40c] ss:$16 sps:$4 sm:$0xff]  }
  0x7d   :  { %1706 = vmatpush1.bf16.msra.mxu0 %v2912_v23  ;;  %1870 = vmatpush1.bf16.msra.mxu1 %v2915_v24  ;;  %v3002_v23 = vld [vmem:[#allocation6 + $0x400] ss:$16 sps:$4 sm:$0xff]   ;;  %v370_v24 = vcombine.high %v3406_v15, %v3406_v15 }
  0x7e   :  { %1707 = vmatprep.subr.bf16.mxu0 %v2920_v25  ;;  %1871 = vmatprep.subr.bf16.mxu1 %v2923_v26  ;;  %v3005_v25 = vld [vmem:[#allocation6 + $0x408] ss:$16 sps:$4 sm:$0xff]   ;;  %v3010_v26 = vld [vmem:[#allocation6 + $0x424] ss:$16 sps:$4 sm:$0xff]   ;;  %v3014_v15 = vld [vmem:[#allocation6 + $0x440] ss:$16 sps:$4 sm:$0xff]  }
  0x81   :  { %1708 = vmatpush1.bf16.msra.mxu0 %v2918_v27  ;;  %1872 = vmatpush1.bf16.msra.mxu1 %v2921_v28  ;;  %v3013_v27 = vld [vmem:[#allocation6 + $0x42c] ss:$16 sps:$4 sm:$0xff]   ;;  %v3008_v28 = vld [vmem:[#allocation6 + $0x420] ss:$16 sps:$4 sm:$0xff]  }
  0x82   :  { %1709 = vmatprep.subr.bf16.mxu0 %v2926_v29  ;;  %1873 = vmatprep.subr.bf16.mxu1 %v2929_v30  ;;  %v3011_v29 = vld [vmem:[#allocation6 + $0x428] ss:$16 sps:$4 sm:$0xff]   ;;  %v3016_v30 = vld [vmem:[#allocation6 + $0x444] ss:$16 sps:$4 sm:$0xff]  }
  0x85   :  { %1710 = vmatpush1.bf16.msra.mxu0 %v2924_v31  ;;  %1874 = vmatpush1.bf16.msra.mxu1 %v2927_v32  ;;  %v3019_v31 = vld [vmem:[#allocation6 + $0x44c] ss:$16 sps:$4 sm:$0xff]   ;;  %v3017_v32 = vld [vmem:[#allocation6 + $0x448] ss:$16 sps:$4 sm:$0xff]  }
  0x86   :  { %1711 = vmatprep.subr.bf16.mxu0 %v2932_v33  ;;  %1875 = vmatprep.subr.bf16.mxu1 %v2935_v34  ;;  %v3022_v33 = vld [vmem:[#allocation6 + $0x464] ss:$16 sps:$4 sm:$0xff]   ;;  %v3025_v34 = vld [vmem:[#allocation6 + $0x46c] ss:$16 sps:$4 sm:$0xff]  }
  0x89   :  { %1712 = vmatpush1.bf16.msra.mxu0 %v2930_v35  ;;  %1876 = vmatpush1.bf16.msra.mxu1 %v2933_v36  ;;  %v3020_v35 = vld [vmem:[#allocation6 + $0x460] ss:$16 sps:$4 sm:$0xff]   ;;  %v3023_v36 = vld [vmem:[#allocation6 + $0x468] ss:$16 sps:$4 sm:$0xff]  }
  0x8a   :  { %1713 = vmatprep.subr.bf16.mxu0 %v2938_v37  ;;  %1877 = vmatprep.subr.bf16.mxu1 %v2941_v38  ;;  %v3028_v37 = vld [vmem:[#allocation6 + $0x484] ss:$16 sps:$4 sm:$0xff]   ;;  %v3031_v38 = vld [vmem:[#allocation6 + $0x48c] ss:$16 sps:$4 sm:$0xff]  }
  0x8d   :  { %1714 = vmatpush1.bf16.msra.mxu0 %v2936_v39  ;;  %1878 = vmatpush1.bf16.msra.mxu1 %v2939_v40  ;;  %v3026_v39 = vld [vmem:[#allocation6 + $0x480] ss:$16 sps:$4 sm:$0xff]   ;;  %v3029_v40 = vld [vmem:[#allocation6 + $0x488] ss:$16 sps:$4 sm:$0xff]  }
  0x8e   :  { %1715 = vmatprep.subr.bf16.mxu0 %v2944_v41  ;;  %1879 = vmatprep.subr.bf16.mxu1 %v2947_v42  ;;  %v3034_v41 = vld [vmem:[#allocation6 + $0x4a4] ss:$16 sps:$4 sm:$0xff]   ;;  %v3037_v42 = vld [vmem:[#allocation6 + $0x4ac] ss:$16 sps:$4 sm:$0xff]  }
  0x91   :  { %1716 = vmatpush1.bf16.msra.mxu0 %v2942_v44  ;;  %1880 = vmatpush1.bf16.msra.mxu1 %v2945_v45  ;;  %v3032_v44 = vld [vmem:[#allocation6 + $0x4a0] ss:$16 sps:$4 sm:$0xff]   ;;  %v3035_v45 = vld [vmem:[#allocation6 + $0x4a8] ss:$16 sps:$4 sm:$0xff]  }
  0x92   :  { %1717 = vmatprep.subr.bf16.mxu0 %v2950_v46  ;;  %1881 = vmatprep.subr.bf16.mxu1 %v2953_v47  ;;  %v3040_v46 = vld [vmem:[#allocation6 + $0x4c4] ss:$16 sps:$4 sm:$0xff]   ;;  %v3043_v47 = vld [vmem:[#allocation6 + $0x4cc] ss:$16 sps:$4 sm:$0xff]  }
  0x95   :  { %1718 = vmatpush1.bf16.msra.mxu0 %v2948_v48  ;;  %1882 = vmatpush1.bf16.msra.mxu1 %v2951_v49  ;;  %v3038_v48 = vld [vmem:[#allocation6 + $0x4c0] ss:$16 sps:$4 sm:$0xff]   ;;  %v3041_v49 = vld [vmem:[#allocation6 + $0x4c8] ss:$16 sps:$4 sm:$0xff]  }
  0x96   :  { %1719 = vmatprep.subr.bf16.mxu0 %v2956_v50  ;;  %1883 = vmatprep.subr.bf16.mxu1 %v2959_v51  ;;  %v3046_v50 = vld [vmem:[#allocation6 + $0x4e4] ss:$16 sps:$4 sm:$0xff]   ;;  %v3049_v51 = vld [vmem:[#allocation6 + $0x4ec] ss:$16 sps:$4 sm:$0xff]  }
  0x99   :  { %1720 = vmatpush1.bf16.msra.mxu0 %v2954_v52  ;;  %1884 = vmatpush1.bf16.msra.mxu1 %v2957_v53  ;;  %v3044_v52 = vld [vmem:[#allocation6 + $0x4e0] ss:$16 sps:$4 sm:$0xff]   ;;  %v3047_v53 = vld [vmem:[#allocation6 + $0x4e8] ss:$16 sps:$4 sm:$0xff]  }
  0x9a   :  { %1721 = vmatprep.subr.bf16.mxu0 %v2962_v54  ;;  %1885 = vmatprep.subr.bf16.mxu1 %v2965_v55  ;;  %v3052_v54 = vld [vmem:[#allocation6 + $0x504] ss:$16 sps:$4 sm:$0xff]   ;;  %v3055_v55 = vld [vmem:[#allocation6 + $0x50c] ss:$16 sps:$4 sm:$0xff]  }
  0x9d   :  { %1722 = vmatpush1.bf16.msra.mxu0 %v2960_v56  ;;  %1886 = vmatpush1.bf16.msra.mxu1 %v2963_v57  ;;  %v3050_v56 = vld [vmem:[#allocation6 + $0x500] ss:$16 sps:$4 sm:$0xff]   ;;  %v3053_v57 = vld [vmem:[#allocation6 + $0x508] ss:$16 sps:$4 sm:$0xff]  }
  0x9e   :  { %1723 = vmatprep.subr.bf16.mxu0 %v2968_v58  ;;  %1887 = vmatprep.subr.bf16.mxu1 %v2971_v59  ;;  %v3058_v58 = vld [vmem:[#allocation6 + $0x524] ss:$16 sps:$4 sm:$0xff]   ;;  %v3061_v59 = vld [vmem:[#allocation6 + $0x52c] ss:$16 sps:$4 sm:$0xff]  }
  0xa1   :  { %1724 = vmatpush1.bf16.msra.mxu0 %v2966_v60  ;;  %1888 = vmatpush1.bf16.msra.mxu1 %v2969_v61  ;;  %v3056_v60 = vld [vmem:[#allocation6 + $0x520] ss:$16 sps:$4 sm:$0xff]   ;;  %v3059_v61 = vld [vmem:[#allocation6 + $0x528] ss:$16 sps:$4 sm:$0xff]  }
  0xa2   :  { %1725 = vmatprep.subr.bf16.mxu0 %v2974_v62  ;;  %1889 = vmatprep.subr.bf16.mxu1 %v2977_v63  ;;  %v3064_v62 = vld [vmem:[#allocation6 + $0x544] ss:$16 sps:$4 sm:$0xff]   ;;  %v3067_v63 = vld [vmem:[#allocation6 + $0x54c] ss:$16 sps:$4 sm:$0xff]  }
  0xa5   :  { %1726 = vmatpush1.bf16.msra.mxu0 %v2972_v0  ;;  %1890 = vmatpush1.bf16.msra.mxu1 %v2975_v1  ;;  %v3062_v0 = vld [vmem:[#allocation6 + $0x540] ss:$16 sps:$4 sm:$0xff]   ;;  %v3065_v1 = vld [vmem:[#allocation6 + $0x548] ss:$16 sps:$4 sm:$0xff]  }
  0xa6   :  { %1727 = vmatprep.subr.bf16.mxu0 %v2980_v2  ;;  %1891 = vmatprep.subr.bf16.mxu1 %v2983_v3  ;;  %v3070_v2 = vld [vmem:[#allocation6 + $0x564] ss:$16 sps:$4 sm:$0xff]   ;;  %v3073_v3 = vld [vmem:[#allocation6 + $0x56c] ss:$16 sps:$4 sm:$0xff]  }
  0xa9   :  { %1728 = vmatpush1.bf16.msra.mxu0 %v2978_v4  ;;  %1892 = vmatpush1.bf16.msra.mxu1 %v2981_v5  ;;  %v3068_v4 = vld [vmem:[#allocation6 + $0x560] ss:$16 sps:$4 sm:$0xff]   ;;  %v3071_v5 = vld [vmem:[#allocation6 + $0x568] ss:$16 sps:$4 sm:$0xff]  }
  0xaa   :  { %1729 = vmatprep.subr.bf16.mxu0 %v2986_v6  ;;  %1893 = vmatprep.subr.bf16.mxu1 %v2989_v7  ;;  %v3076_v6 = vld [vmem:[#allocation6 + $0x584] ss:$16 sps:$4 sm:$0xff]   ;;  %v3079_v7 = vld [vmem:[#allocation6 + $0x58c] ss:$16 sps:$4 sm:$0xff]  }
  0xad   :  { %1730 = vmatpush1.bf16.msra.mxu0 %v2984_v8  ;;  %1894 = vmatpush1.bf16.msra.mxu1 %v2987_v9  ;;  %v3074_v8 = vld [vmem:[#allocation6 + $0x580] ss:$16 sps:$4 sm:$0xff]   ;;  %v3077_v9 = vld [vmem:[#allocation6 + $0x588] ss:$16 sps:$4 sm:$0xff]  }
  0xae   :  { %1731 = vmatprep.subr.bf16.mxu0 %v2992_v10  ;;  %1895 = vmatprep.subr.bf16.mxu1 %v2995_v11  ;;  %v3082_v10 = vld [vmem:[#allocation6 + $0x5a4] ss:$16 sps:$4 sm:$0xff]   ;;  %v3085_v11 = vld [vmem:[#allocation6 + $0x5ac] ss:$16 sps:$4 sm:$0xff]  }
  0xb1   :  { %1732 = vmatpush1.bf16.msra.mxu0 %v2990_v12  ;;  %1896 = vmatpush1.bf16.msra.mxu1 %v2993_v13  ;;  %v3080_v12 = vld [vmem:[#allocation6 + $0x5a0] ss:$16 sps:$4 sm:$0xff]   ;;  %v3083_v13 = vld [vmem:[#allocation6 + $0x5a8] ss:$16 sps:$4 sm:$0xff]  }
  0xb2   :  { %1733 = vmatprep.subr.bf16.mxu0 %v2998_v14  ;;  %1897 = vmatprep.subr.bf16.mxu1 %v3001_v16  ;;  %v3088_v14 = vld [vmem:[#allocation6 + $0x5c4] ss:$16 sps:$4 sm:$0xff]   ;;  %v3091_v16 = vld [vmem:[#allocation6 + $0x5cc] ss:$16 sps:$4 sm:$0xff]  }
  0xb5   :  { %1734 = vmatpush1.bf16.msra.mxu0 %v2996_v17  ;;  %1898 = vmatpush1.bf16.msra.mxu1 %v2999_v18  ;;  %v3086_v17 = vld [vmem:[#allocation6 + $0x5c0] ss:$16 sps:$4 sm:$0xff]   ;;  %v3089_v18 = vld [vmem:[#allocation6 + $0x5c8] ss:$16 sps:$4 sm:$0xff]  }
  0xb6   :  { %1744 = vmatprep.subr.bf16.mxu0 %v3004_v19  ;;  %1908 = vmatprep.subr.bf16.mxu1 %v3007_v22  ;;  %v3094_v19 = vld [vmem:[#allocation6 + $0x5e4] ss:$16 sps:$4 sm:$0xff]   ;;  %v3097_v22 = vld [vmem:[#allocation6 + $0x5ec] ss:$16 sps:$4 sm:$0xff]  }
  0xb8   :  { %1736 = vmatmul.mubr.bf16.vlgmr.msra.gmra.mrb[0].mxu0 %v370_v24  ;;  %1900 = vmatmul.mubr.bf16.vlgmr.msra.gmra.mrb[0].mxu1 %v370_v24  ;;  %v3095_v24 = vld [vmem:[#allocation6 + $0x5e8] ss:$16 sps:$4 sm:$0xff]  }
  0xb9   :  { %1745 = vmatpush1.bf16.msra.mxu0 %v3002_v23  ;;  %1909 = vmatpush1.bf16.msra.mxu1 %v3005_v25  ;;  %v3092_v23 = vld [vmem:[#allocation6 + $0x5e0] ss:$16 sps:$4 sm:$0xff]   ;;  %v3101_v25 = vld [vmem:[#allocation6 + $0x604] ss:$16 sps:$4 sm:$0xff]  }
  0xba   :  { %1746 = vmatprep.subr.bf16.mxu0 %v3010_v26  ;;  %1910 = vmatprep.subr.bf16.mxu1 %v3013_v27  ;;  %v3104_v26 = vld [vmem:[#allocation6 + $0x60c] ss:$16 sps:$4 sm:$0xff]   ;;  %v3099_v27 = vld [vmem:[#allocation6 + $0x600] ss:$16 sps:$4 sm:$0xff]  }
  0xbb   :  { %1776 = vmatprep.mubr.bf16.mxu0 %v3409_v20  ;;  %1940 = vmatprep.mubr.bf16.mxu1 %v3409_v20 }
  0xbd   :  { %1747 = vmatpush1.bf16.msra.mxu0 %v3008_v28  ;;  %1911 = vmatpush1.bf16.msra.mxu1 %v3011_v29  ;;  %v3102_v28 = vld [vmem:[#allocation6 + $0x608] ss:$16 sps:$4 sm:$0xff]   ;;  %v3107_v29 = vld [vmem:[#allocation6 + $0x624] ss:$16 sps:$4 sm:$0xff]  }
  0xbe   :  { %1748 = vmatprep.subr.bf16.mxu0 %v3016_v30  ;;  %1912 = vmatprep.subr.bf16.mxu1 %v3019_v31  ;;  %v3110_v30 = vld [vmem:[#allocation6 + $0x62c] ss:$16 sps:$4 sm:$0xff]   ;;  %v3105_v31 = vld [vmem:[#allocation6 + $0x620] ss:$16 sps:$4 sm:$0xff]  }
  0xc1   :  { %1749 = vmatpush1.bf16.msra.mxu0 %v3014_v15  ;;  %1913 = vmatpush1.bf16.msra.mxu1 %v3017_v32  ;;  %v373_v15 = vcombine.high %v3409_v20, %v3409_v20  ;;  %v3108_v32 = vld [vmem:[#allocation6 + $0x628] ss:$16 sps:$4 sm:$0xff]   ;;  %v3119_v20 = vld [vmem:[#allocation6 + $0x664] ss:$16 sps:$4 sm:$0xff]  }
  0xc2   :  { %1750 = vmatprep.subr.bf16.mxu0 %v3022_v33  ;;  %1914 = vmatprep.subr.bf16.mxu1 %v3025_v34  ;;  %v3113_v33 = vld [vmem:[#allocation6 + $0x644] ss:$16 sps:$4 sm:$0xff]   ;;  %v3116_v34 = vld [vmem:[#allocation6 + $0x64c] ss:$16 sps:$4 sm:$0xff]  }
  0xc5   :  { %1751 = vmatpush1.bf16.msra.mxu0 %v3020_v35  ;;  %1915 = vmatpush1.bf16.msra.mxu1 %v3023_v36  ;;  %v3111_v35 = vld [vmem:[#allocation6 + $0x640] ss:$16 sps:$4 sm:$0xff]   ;;  %v3114_v36 = vld [vmem:[#allocation6 + $0x648] ss:$16 sps:$4 sm:$0xff]  }
  0xc6   :  { %1752 = vmatprep.subr.bf16.mxu0 %v3028_v37  ;;  %1916 = vmatprep.subr.bf16.mxu1 %v3031_v38  ;;  %v3122_v37 = vld [vmem:[#allocation6 + $0x66c] ss:$16 sps:$4 sm:$0xff]   ;;  %v3117_v38 = vld [vmem:[#allocation6 + $0x660] ss:$16 sps:$4 sm:$0xff]  }
  0xc9   :  { %1753 = vmatpush1.bf16.msra.mxu0 %v3026_v39  ;;  %1917 = vmatpush1.bf16.msra.mxu1 %v3029_v40  ;;  %v3120_v39 = vld [vmem:[#allocation6 + $0x668] ss:$16 sps:$4 sm:$0xff]   ;;  %v3125_v40 = vld [vmem:[#allocation6 + $0x684] ss:$16 sps:$4 sm:$0xff]  }
  0xca   :  { %1754 = vmatprep.subr.bf16.mxu0 %v3034_v41  ;;  %1918 = vmatprep.subr.bf16.mxu1 %v3037_v42  ;;  %v3128_v41 = vld [vmem:[#allocation6 + $0x68c] ss:$16 sps:$4 sm:$0xff]   ;;  %v3123_v42 = vld [vmem:[#allocation6 + $0x680] ss:$16 sps:$4 sm:$0xff]  }
  0xcd   :  { %1755 = vmatpush1.bf16.msra.mxu0 %v3032_v44  ;;  %1919 = vmatpush1.bf16.msra.mxu1 %v3035_v45  ;;  %v3126_v44 = vld [vmem:[#allocation6 + $0x688] ss:$16 sps:$4 sm:$0xff]   ;;  %v3131_v45 = vld [vmem:[#allocation6 + $0x6a4] ss:$16 sps:$4 sm:$0xff]  }
  0xce   :  { %1756 = vmatprep.subr.bf16.mxu0 %v3040_v46  ;;  %1920 = vmatprep.subr.bf16.mxu1 %v3043_v47  ;;  %v3134_v46 = vld [vmem:[#allocation6 + $0x6ac] ss:$16 sps:$4 sm:$0xff]   ;;  %v3129_v47 = vld [vmem:[#allocation6 + $0x6a0] ss:$16 sps:$4 sm:$0xff]  }
  0xd1   :  { %1757 = vmatpush1.bf16.msra.mxu0 %v3038_v48  ;;  %1921 = vmatpush1.bf16.msra.mxu1 %v3041_v49  ;;  %v3132_v48 = vld [vmem:[#allocation6 + $0x6a8] ss:$16 sps:$4 sm:$0xff]   ;;  %v3137_v49 = vld [vmem:[#allocation6 + $0x6c4] ss:$16 sps:$4 sm:$0xff]  }
  0xd2   :  { %1758 = vmatprep.subr.bf16.mxu0 %v3046_v50  ;;  %1922 = vmatprep.subr.bf16.mxu1 %v3049_v51  ;;  %v3140_v50 = vld [vmem:[#allocation6 + $0x6cc] ss:$16 sps:$4 sm:$0xff]   ;;  %v3135_v51 = vld [vmem:[#allocation6 + $0x6c0] ss:$16 sps:$4 sm:$0xff]  }
  0xd5   :  { %1759 = vmatpush1.bf16.msra.mxu0 %v3044_v52  ;;  %1923 = vmatpush1.bf16.msra.mxu1 %v3047_v53  ;;  %v3138_v52 = vld [vmem:[#allocation6 + $0x6c8] ss:$16 sps:$4 sm:$0xff]   ;;  %v3143_v53 = vld [vmem:[#allocation6 + $0x6e4] ss:$16 sps:$4 sm:$0xff]  }
  0xd6   :  { %1760 = vmatprep.subr.bf16.mxu0 %v3052_v54  ;;  %1924 = vmatprep.subr.bf16.mxu1 %v3055_v55  ;;  %v3146_v54 = vld [vmem:[#allocation6 + $0x6ec] ss:$16 sps:$4 sm:$0xff]   ;;  %v3141_v55 = vld [vmem:[#allocation6 + $0x6e0] ss:$16 sps:$4 sm:$0xff]  }
  0xd9   :  { %1761 = vmatpush1.bf16.msra.mxu0 %v3050_v56  ;;  %1925 = vmatpush1.bf16.msra.mxu1 %v3053_v57  ;;  %v3144_v56 = vld [vmem:[#allocation6 + $0x6e8] ss:$16 sps:$4 sm:$0xff]   ;;  %v3149_v57 = vld [vmem:[#allocation6 + $0x704] ss:$16 sps:$4 sm:$0xff]  }
  0xda   :  { %1762 = vmatprep.subr.bf16.mxu0 %v3058_v58  ;;  %1926 = vmatprep.subr.bf16.mxu1 %v3061_v59  ;;  %v3152_v58 = vld [vmem:[#allocation6 + $0x70c] ss:$16 sps:$4 sm:$0xff]   ;;  %v3147_v59 = vld [vmem:[#allocation6 + $0x700] ss:$16 sps:$4 sm:$0xff]  }
  0xdd   :  { %1763 = vmatpush1.bf16.msra.mxu0 %v3056_v60  ;;  %1927 = vmatpush1.bf16.msra.mxu1 %v3059_v61  ;;  %v3150_v60 = vld [vmem:[#allocation6 + $0x708] ss:$16 sps:$4 sm:$0xff]   ;;  %v3155_v61 = vld [vmem:[#allocation6 + $0x724] ss:$16 sps:$4 sm:$0xff]  }
  0xde   :  { %1764 = vmatprep.subr.bf16.mxu0 %v3064_v62  ;;  %1928 = vmatprep.subr.bf16.mxu1 %v3067_v63  ;;  %v3158_v62 = vld [vmem:[#allocation6 + $0x72c] ss:$16 sps:$4 sm:$0xff]   ;;  %v3153_v63 = vld [vmem:[#allocation6 + $0x720] ss:$16 sps:$4 sm:$0xff]  }
  0xe1   :  { %1765 = vmatpush1.bf16.msra.mxu0 %v3062_v0  ;;  %1929 = vmatpush1.bf16.msra.mxu1 %v3065_v1  ;;  %v3156_v0 = vld [vmem:[#allocation6 + $0x728] ss:$16 sps:$4 sm:$0xff]   ;;  %v3161_v1 = vld [vmem:[#allocation6 + $0x744] ss:$16 sps:$4 sm:$0xff]  }
  0xe2   :  { %1766 = vmatprep.subr.bf16.mxu0 %v3070_v2  ;;  %1930 = vmatprep.subr.bf16.mxu1 %v3073_v3  ;;  %v3164_v2 = vld [vmem:[#allocation6 + $0x74c] ss:$16 sps:$4 sm:$0xff]   ;;  %v3159_v3 = vld [vmem:[#allocation6 + $0x740] ss:$16 sps:$4 sm:$0xff]  }
  0xe5   :  { %1767 = vmatpush1.bf16.msra.mxu0 %v3068_v4  ;;  %1931 = vmatpush1.bf16.msra.mxu1 %v3071_v5  ;;  %v3162_v4 = vld [vmem:[#allocation6 + $0x748] ss:$16 sps:$4 sm:$0xff]   ;;  %v3167_v5 = vld [vmem:[#allocation6 + $0x764] ss:$16 sps:$4 sm:$0xff]  }
  0xe6   :  { %1768 = vmatprep.subr.bf16.mxu0 %v3076_v6  ;;  %1932 = vmatprep.subr.bf16.mxu1 %v3079_v7  ;;  %v3170_v6 = vld [vmem:[#allocation6 + $0x76c] ss:$16 sps:$4 sm:$0xff]   ;;  %v3165_v7 = vld [vmem:[#allocation6 + $0x760] ss:$16 sps:$4 sm:$0xff]  }
  0xe9   :  { %1769 = vmatpush1.bf16.msra.mxu0 %v3074_v8  ;;  %1933 = vmatpush1.bf16.msra.mxu1 %v3077_v9  ;;  %v3168_v8 = vld [vmem:[#allocation6 + $0x768] ss:$16 sps:$4 sm:$0xff]   ;;  %v3173_v9 = vld [vmem:[#allocation6 + $0x784] ss:$16 sps:$4 sm:$0xff]  }
  0xea   :  { %1770 = vmatprep.subr.bf16.mxu0 %v3082_v10  ;;  %1934 = vmatprep.subr.bf16.mxu1 %v3085_v11  ;;  %v3176_v10 = vld [vmem:[#allocation6 + $0x78c] ss:$16 sps:$4 sm:$0xff]   ;;  %v3171_v11 = vld [vmem:[#allocation6 + $0x780] ss:$16 sps:$4 sm:$0xff]  }
  0xed   :  { %1771 = vmatpush1.bf16.msra.mxu0 %v3080_v12  ;;  %1935 = vmatpush1.bf16.msra.mxu1 %v3083_v13  ;;  %v3174_v12 = vld [vmem:[#allocation6 + $0x788] ss:$16 sps:$4 sm:$0xff]   ;;  %v3179_v13 = vld [vmem:[#allocation6 + $0x7a4] ss:$16 sps:$4 sm:$0xff]  }
  0xee   :  { %1772 = vmatprep.subr.bf16.mxu0 %v3088_v14  ;;  %1936 = vmatprep.subr.bf16.mxu1 %v3091_v16  ;;  %v3182_v14 = vld [vmem:[#allocation6 + $0x7ac] ss:$16 sps:$4 sm:$0xff]   ;;  %v3177_v16 = vld [vmem:[#allocation6 + $0x7a0] ss:$16 sps:$4 sm:$0xff]  }
  0xf1   :  { %1773 = vmatpush1.bf16.msra.mxu0 %v3086_v17  ;;  %1937 = vmatpush1.bf16.msra.mxu1 %v3089_v18  ;;  %v3180_v17 = vld [vmem:[#allocation6 + $0x7a8] ss:$16 sps:$4 sm:$0xff]   ;;  %v3185_v18 = vld [vmem:[#allocation6 + $0x7c4] ss:$16 sps:$4 sm:$0xff]  }
  0xf2   :  { %1774 = vmatprep.subr.bf16.mxu0 %v3094_v19  ;;  %1938 = vmatprep.subr.bf16.mxu1 %v3097_v22  ;;  %v3188_v19 = vld [vmem:[#allocation6 + $0x7cc] ss:$16 sps:$4 sm:$0xff]   ;;  %v3183_v22 = vld [vmem:[#allocation6 + $0x7c0] ss:$16 sps:$4 sm:$0xff]  }
  0xf5   :  { %1775 = vmatpush1.bf16.msra.mxu0 %v3092_v23  ;;  %1939 = vmatpush1.bf16.msra.mxu1 %v3095_v24  ;;  %v3186_v23 = vld [vmem:[#allocation6 + $0x7c8] ss:$16 sps:$4 sm:$0xff]   ;;  %v3191_v24 = vld [vmem:[#allocation6 + $0x7e4] ss:$16 sps:$4 sm:$0xff]  }
  0xf6   :  { %1785 = vmatprep.subr.bf16.mxu0 %v3101_v25  ;;  %1949 = vmatprep.subr.bf16.mxu1 %v3104_v26  ;;  %v3194_v25 = vld [vmem:[#allocation6 + $0x7ec] ss:$16 sps:$4 sm:$0xff]   ;;  %v3189_v26 = vld [vmem:[#allocation6 + $0x7e0] ss:$16 sps:$4 sm:$0xff]  }
  0xf8   :  { %1777 = vmatmul.mubr.bf16.vlgmr.msra.gmra.mrb[0].mxu0 %v3412_v21  ;;  %1941 = vmatmul.mubr.bf16.vlgmr.msra.gmra.mrb[0].mxu1 %v3412_v21 }
  0xf9   :  { %1786 = vmatpush1.bf16.msra.mxu0 %v3099_v27  ;;  %1950 = vmatpush1.bf16.msra.mxu1 %v3102_v28  ;;  %v3192_v27 = vld [vmem:[#allocation6 + $0x7e8] ss:$16 sps:$4 sm:$0xff]   ;;  %v3195_v28 = vld [vmem:[#allocation8 + $0x40] sm:$0xff]  }
  0xfa   :  { %1787 = vmatprep.subr.bf16.mxu0 %v3107_v29  ;;  %1951 = vmatprep.subr.bf16.mxu1 %v3110_v30  ;;  %v3197_v29 = vld [vmem:[#allocation8 + $0xc0] sm:$0xff]   ;;  %v371_v30 = vcombine.high %v3412_v21, %v3412_v21  ;;  %v3204_v21 = vld [vmem:[#allocation8 + $0x10] sm:$0xff]  }
  0xfb   :  { %1817 = vmatprep.mubr.bf16.mxu0 %v373_v15  ;;  %1981 = vmatprep.mubr.bf16.mxu1 %v373_v15  ;;  %v3198_v15 = vld [vmem:[#allocation8 + $0x80] sm:$0xff]  }
  0xfd   :  { %1788 = vmatpush1.bf16.msra.mxu0 %v3105_v31  ;;  %1952 = vmatpush1.bf16.msra.mxu1 %v3108_v32  ;;  %v3196_v31 = vld [vmem:[#allocation8] sm:$0xff]   ;;  %v3199_v32 = vld [vmem:[#allocation8 + $0x48] sm:$0xff]  }
  0xfe   :  { %1789 = vmatprep.subr.bf16.mxu0 %v3113_v33  ;;  %1953 = vmatprep.subr.bf16.mxu1 %v3116_v34  ;;  %v3201_v33 = vld [vmem:[#allocation8 + $0xc8] sm:$0xff]  }
  0xff   :  { %v3200_v34 = vld [vmem:[#allocation8 + $0x8] sm:$0xff]  }
 0x101   :  { %1790 = vmatpush1.bf16.msra.mxu0 %v3111_v35  ;;  %1954 = vmatpush1.bf16.msra.mxu1 %v3114_v36  ;;  %v3202_v35 = vld [vmem:[#allocation8 + $0x88] sm:$0xff]   ;;  %v3203_v36 = vld [vmem:[#allocation8 + $0x50] sm:$0xff]  }
 0x102   :  { %1791 = vmatprep.subr.bf16.mxu0 %v3119_v20  ;;  %1955 = vmatprep.subr.bf16.mxu1 %v3122_v37  ;;  %v3205_v20 = vld [vmem:[#allocation8 + $0xd0] sm:$0xff]  }
 0x103   :  { %v3206_v37 = vld [vmem:[#allocation8 + $0x90] sm:$0xff]  }
 0x105   :  { %1792 = vmatpush1.bf16.msra.mxu0 %v3117_v38  ;;  %1956 = vmatpush1.bf16.msra.mxu1 %v3120_v39  ;;  %v3207_v38 = vld [vmem:[#allocation8 + $0x58] sm:$0xff]  }
 0x106   :  { %1793 = vmatprep.subr.bf16.mxu0 %v3125_v40  ;;  %1957 = vmatprep.subr.bf16.mxu1 %v3128_v41  ;;  %v3208_v39 = vld [vmem:[#allocation8 + $0x18] sm:$0xff]  }
 0x107   :  { %v3209_v40 = vld [vmem:[#allocation8 + $0xd8] sm:$0xff]  }
 0x108   :  { %v3210_v41 = vld [vmem:[#allocation8 + $0x98] sm:$0xff]  }
 0x109   :  { %1794 = vmatpush1.bf16.msra.mxu0 %v3123_v42  ;;  %1958 = vmatpush1.bf16.msra.mxu1 %v3126_v44  ;;  %v3211_v42 = vld [vmem:[#allocation8 + $0x60] sm:$0xff]  }
 0x10a   :  { %1795 = vmatprep.subr.bf16.mxu0 %v3131_v45  ;;  %1959 = vmatprep.subr.bf16.mxu1 %v3134_v46  ;;  %v3212_v44 = vld [vmem:[#allocation8 + $0x20] sm:$0xff]  }
 0x10b   :  { %v3213_v45 = vld [vmem:[#allocation8 + $0xe0] sm:$0xff]  }
 0x10c   :  { %v3214_v46 = vld [vmem:[#allocation8 + $0xa0] sm:$0xff]  }
 0x10d   :  { %1796 = vmatpush1.bf16.msra.mxu0 %v3129_v47  ;;  %1960 = vmatpush1.bf16.msra.mxu1 %v3132_v48  ;;  %v3215_v47 = vld [vmem:[#allocation8 + $0x68] sm:$0xff]  }
 0x10e   :  { %1797 = vmatprep.subr.bf16.mxu0 %v3137_v49  ;;  %1961 = vmatprep.subr.bf16.mxu1 %v3140_v50  ;;  %v3216_v48 = vld [vmem:[#allocation8 + $0x28] sm:$0xff]  }
 0x10f   :  { %v3217_v49 = vld [vmem:[#allocation8 + $0xe8] sm:$0xff]  }
 0x110   :  { %v3218_v50 = vld [vmem:[#allocation8 + $0xa8] sm:$0xff]  }
 0x111   :  { %1798 = vmatpush1.bf16.msra.mxu0 %v3135_v51  ;;  %1962 = vmatpush1.bf16.msra.mxu1 %v3138_v52  ;;  %v3219_v51 = vld [vmem:[#allocation8 + $0x70] sm:$0xff]  }
 0x112   :  { %1799 = vmatprep.subr.bf16.mxu0 %v3143_v53  ;;  %1963 = vmatprep.subr.bf16.mxu1 %v3146_v54  ;;  %v3220_v52 = vld [vmem:[#allocation8 + $0x30] sm:$0xff]  }
 0x113   :  { %v3221_v53 = vld [vmem:[#allocation8 + $0xf0] sm:$0xff]  }
 0x114   :  { %v3222_v54 = vld [vmem:[#allocation8 + $0xb0] sm:$0xff]  }
 0x115   :  { %1800 = vmatpush1.bf16.msra.mxu0 %v3141_v55  ;;  %1964 = vmatpush1.bf16.msra.mxu1 %v3144_v56  ;;  %v3223_v55 = vld [vmem:[#allocation8 + $0x78] sm:$0xff]  }
 0x116   :  { %1801 = vmatprep.subr.bf16.mxu0 %v3149_v57  ;;  %1965 = vmatprep.subr.bf16.mxu1 %v3152_v58  ;;  %v3225_v56 = vld [vmem:[#allocation8 + $0xf8] sm:$0xff]  }
 0x117   :  { %v3224_v57 = vld [vmem:[#allocation8 + $0x38] sm:$0xff]  }
 0x118   :  { %v3226_v58 = vld [vmem:[#allocation8 + $0xb8] sm:$0xff]  }
 0x119   :  { %1802 = vmatpush1.bf16.msra.mxu0 %v3147_v59  ;;  %1966 = vmatpush1.bf16.msra.mxu1 %v3150_v60  ;;  %v3329_v59 = vmov 1983009808  }
 0x11a   :  { %1803 = vmatprep.subr.bf16.mxu0 %v3155_v61  ;;  %1967 = vmatprep.subr.bf16.mxu1 %v3158_v62  ;;  %v1997_v60 = vunpack.c.l.s4 %v3329_v59  ;;  %v2022_v61 = vsub.s32 0, %v3397_v43  ;;  %v2026_v62 = vsub.s32 1, %v3397_v43 }
 0x11d   :  { %1804 = vmatpush1.bf16.msra.mxu0 %v3153_v63  ;;  %1968 = vmatpush1.bf16.msra.mxu1 %v3156_v0  ;;  %v2030_v63 = vsub.s32 2, %v3397_v43  ;;  %v2034_v0 = vsub.s32 3, %v3397_v43 }
 0x11e   :  { %1805 = vmatprep.subr.bf16.mxu0 %v3161_v1  ;;  %1969 = vmatprep.subr.bf16.mxu1 %v3164_v2  ;;  %v2018_v1 = vld [vmem:[%s3451_s2] sm:$0xf]  ;;  %v1998_v2 = vunpack.c.0.s8 %v1997_v60 }
 0x121   :  { %1806 = vmatpush1.bf16.msra.mxu0 %v3159_v3  ;;  %1970 = vmatpush1.bf16.msra.mxu1 %v3162_v4  ;;  %v2023_v3 = vrot.slane %v2018_v1, %v2022_v61  ;;  %v2027_v4 = vrot.slane %v2018_v1, %v2026_v62 }
 0x122   :  { %1807 = vmatprep.subr.bf16.mxu0 %v3167_v5  ;;  %1971 = vmatprep.subr.bf16.mxu1 %v3170_v6  ;;  %v2031_v5 = vrot.slane %v2018_v1, %v2030_v63  ;;  %v2035_v6 = vrot.slane %v2018_v1, %v2034_v0 }
 0x125   :  { %1808 = vmatpush1.bf16.msra.mxu0 %v3165_v7  ;;  %1972 = vmatpush1.bf16.msra.mxu1 %v3168_v8  ;;  %v2001_v7 = vsub.s32 %v1998_v2, %v3397_v43  ;;  %v2036_v8 = vcombine.low %v2023_v3, %v2027_v4 }
 0x126   :  { %1809 = vmatprep.subr.bf16.mxu0 %v3173_v9  ;;  %1973 = vmatprep.subr.bf16.mxu1 %v3176_v10  ;;  %v2037_v9 = vcombine.low %v2031_v5, %v2035_v6 }
 0x129   :  { %1810 = vmatpush1.bf16.msra.mxu0 %v3171_v11  ;;  %1974 = vmatpush1.bf16.msra.mxu1 %v3174_v12  ;;  %v2044_v12 = vrot.slane %v2036_v8, %v2001_v7 }
 0x12a   :  { %1811 = vmatprep.subr.bf16.mxu0 %v3179_v13  ;;  %1975 = vmatprep.subr.bf16.mxu1 %v3182_v14  ;;  %v2051_v13 = vrot.slane %v2037_v9, %v2001_v7 }
 0x12d   :  { %1812 = vmatpush1.bf16.msra.mxu0 %v3177_v16  ;;  %1976 = vmatpush1.bf16.msra.mxu1 %v3180_v17 }
 0x12e   :  { %1813 = vmatprep.subr.bf16.mxu0 %v3185_v18  ;;  %1977 = vmatprep.subr.bf16.mxu1 %v3188_v19 }
 0x131   :  { %1814 = vmatpush1.bf16.msra.mxu0 %v3183_v22  ;;  %1978 = vmatpush1.bf16.msra.mxu1 %v3186_v23 }
 0x132   :  { %1815 = vmatprep.subr.bf16.mxu0 %v3191_v24  ;;  %1979 = vmatprep.subr.bf16.mxu1 %v3194_v25 }
 0x135   :  { %1816 = vmatpush1.bf16.msra.mxu0 %v3189_v26  ;;  %1980 = vmatpush1.bf16.msra.mxu1 %v3192_v27  ;;  %v2052_v27 = vcombine.low %v2044_v12, %v2051_v13 }
 0x136   :  { %2732 = vmatprep.subr.bf16.mxu0 %v3195_v28  ;;  %2754 = vmatprep.subr.bf16.mxu1 %v3197_v29 }
 0x138   :  { %1818 = vmatmul.mubr.bf16.vlgmr.msra.gmra.mrb[0].mxu0 %v371_v30  ;;  %1982 = vmatmul.mubr.bf16.vlgmr.msra.gmra.mrb[0].mxu1 %v371_v30 }
 0x139   :  { %2733 = vmatpush3.bf16.msra.mxu0 %v3196_v31  ;;  %2755 = vmatpush3.bf16.msra.mxu1 %v3198_v15 }
 0x13a   :  { %2734 = vmatprep.subr.bf16.mxu0 %v3199_v32  ;;  %2756 = vmatprep.subr.bf16.mxu1 %v3201_v33 }
 0x13d   :  { %2735 = vmatpush3.bf16.msra.mxu0 %v3200_v34  ;;  %2757 = vmatpush3.bf16.msra.mxu1 %v3202_v35 }
 0x13e   :  { %2736 = vmatprep.subr.bf16.mxu0 %v3203_v36  ;;  %2758 = vmatprep.subr.bf16.mxu1 %v3205_v20 }
 0x141   :  { %2737 = vmatpush3.bf16.msra.mxu0 %v3204_v21  ;;  %2759 = vmatpush3.bf16.msra.mxu1 %v3206_v37  ;;  %v2699_v37 = vld [vmem:[%s3453_s4] ss:$0 sm:$0xff] }
 0x142   :  { %2738 = vmatprep.subr.bf16.mxu0 %v3207_v38  ;;  %2760 = vmatprep.subr.bf16.mxu1 %v3209_v40 }
 0x145   :  { %2739 = vmatpush3.bf16.msra.mxu0 %v3208_v39  ;;  %2761 = vmatpush3.bf16.msra.mxu1 %v3210_v41 }
 0x146   :  { %2740 = vmatprep.subr.bf16.mxu0 %v3211_v42  ;;  %2762 = vmatprep.subr.bf16.mxu1 %v3213_v45 }
 0x149   :  { %2741 = vmatpush3.bf16.msra.mxu0 %v3212_v44  ;;  %2763 = vmatpush3.bf16.msra.mxu1 %v3214_v46 }
 0x14a   :  { %2742 = vmatprep.subr.bf16.mxu0 %v3215_v47  ;;  %2764 = vmatprep.subr.bf16.mxu1 %v3217_v49 }
 0x14d   :  { %2743 = vmatpush3.bf16.msra.mxu0 %v3216_v48  ;;  %2765 = vmatpush3.bf16.msra.mxu1 %v3218_v50 }
 0x14e   :  { %2744 = vmatprep.subr.bf16.mxu0 %v3219_v51  ;;  %2766 = vmatprep.subr.bf16.mxu1 %v3221_v53 }
 0x151   :  { %2745 = vmatpush3.bf16.msra.mxu0 %v3220_v52  ;;  %2767 = vmatpush3.bf16.msra.mxu1 %v3222_v54 }
 0x152   :  { %2746 = vmatprep.subr.bf16.mxu0 %v3223_v55  ;;  %2768 = vmatprep.subr.bf16.mxu1 %v3225_v56 }
 0x155   :  { %2747 = vmatpush3.bf16.msra.mxu0 %v3224_v57  ;;  %2769 = vmatpush3.bf16.msra.mxu1 %v3226_v58 }
 0x20b   :  { %v1819_v10 = vpop.f32.mrb[0].mxu0  ;;  %v1983_v11 = vpop.f32.mrb[0].mxu1 }
 0x20c   :  { %v1821_v14 = vpop.f32.mrb[1].mxu0  ;;  %v1985_v16 = vpop.f32.mrb[1].mxu1 }
 0x20d   :  { %v1994_v17 = vcombine.low %v1819_v10, %v1821_v14  ;;  %v1995_v18 = vcombine.low %v1983_v11, %v1985_v16  ;;  %v1823_v19 = vpop.f32.mrb[2].mxu0  ;;  %v1987_v22 = vpop.f32.mrb[2].mxu1 }
 0x20e   :  { %v1824_v23 = vpop.f32.mrb[3].mxu0  ;;  %v1988_v24 = vpop.f32.mrb[3].mxu1 }
 0x20f   :  { %v2002_v25 = vrot.slane %v1994_v17, %v2001_v7  ;;  %v2009_v26 = vrot.slane %v1995_v18, %v2001_v7 }
 0x211   :  { %v2010_v28 = vcombine.low %v2002_v25, %v2009_v26 }
 0x213   :  { %v2054_v29 = vadd.f32 %v2052_v27, %v2010_v28 }
 0x215   :  { %v2055_v43 = vmax.f32 %v2054_v29, 0.0 }
 0x217   :  { %v2064_v30 = vrot.slane %v2055_v43, %v2001_v7  ;;  %v2057_v31 = vcombine.high %v2055_v43, %v2055_v43 }
 0x219   :  { %v2072_v15 = vcombine.high %v2064_v30, %v2064_v30  ;;  %v2071_v32 = vrot.slane %v2057_v31, %v2001_v7  ;;  %v2078_v35 = vpack.c.bf16 %v2064_v30, %v2064_v30 }
 0x21b   :  { %v2079_v33 = vpack.c.bf16 %v2072_v15, %v2072_v15  ;;  %v2073_v34 = vcombine.high %v2071_v32, %v2071_v32  ;;  %v2080_v20 = vpack.c.bf16 %v2071_v32, %v2071_v32 }
 0x21d   :  { %2377 = vmatprep.mubr.bf16.mxu0 %v2079_v33  ;;  %v2081_v36 = vpack.c.bf16 %v2073_v34, %v2073_v34 }
 0x21e   :  { %2378 = vmatmul.mubr.bf16.vlgmr.msra.gmra.mrb[4].mxu0 %v2078_v35 }
 0x21f   :  { %2417 = vmatprep.mubr.bf16.mxu1 %v2081_v36 }
 0x220   :  { %2418 = vmatmul.mubr.bf16.vlgmr.msra.gmra.mrb[4].mxu1 %v2080_v20 }
 0x2f1   :  { %v2748_v21 = vpop.f32.mrb[4].mxu0 }
 0x2f2   :  { %v2749_v38 = vpop.f32.mrb[5].mxu0 }
 0x2f3   :  { %v2750_v39 = vadd.f32 %v2749_v38, %v2748_v21  ;;  %v2751_v40 = vpop.f32.mrb[6].mxu0  ;;  %v2770_v41 = vpop.f32.mrb[4].mxu1 }
 0x2f4   :  { %v2752_v42 = vpop.f32.mrb[7].mxu0  ;;  %v2771_v44 = vpop.f32.mrb[5].mxu1 }
 0x2f5   :  { %v2380_v45 = vadd.f32 %v2750_v39, %v2699_v37  ;;  %v2772_v46 = vadd.f32 %v2771_v44, %v2770_v41  ;;  %v2773_v47 = vpop.f32.mrb[6].mxu1 }
 0x2f6   :  { %v2774_v48 = vpop.f32.mrb[7].mxu1 }
 0x2f7   :  { %v2420_v49 = vadd.f32 %v2772_v46, %v2380_v45 }
 0x2f9   :  { %v2425_v50 = vpack.c.bf16 %v2420_v49, %v2420_v49 }
 0x2fb   :  { %2426 = vst [vmem:[#allocation9] sm:$0x1] %v2425_v50 }
 0x2fc   :  { %3304 = shalt.err (!%p3301_p0)
}
 0x2fd   :  { %s3305_s13 = scalar_lea.hbm %s3454_s5, 16 }
 0x2fe   :  { %p3306_p1 = scmp.ne.s32.totalorder %s3454_s5, %s3305_s13  ;;  %p3309_p2 = scmp.lt.u32.totalorder %s3305_s13, %s3454_s5 }
 0x300   :  { %p3311_p3 = pnand %p3309_p2, %p3306_p1 }
 0x302   :  { %3314 = shalt.err (!%p3311_p3)
}
 0x303   :  { %2436 = dma.vmem_to_hbm [thread:$0]  %s2434_s9, 16, %s3454_s5, [#allocation5]  }
 0x304   :  { %3319 = dma.done.wait [#allocation5], 16  }
 0x305   :  { %3320 = vsyncadd [#allocation5], 4294967280 }
 0x306   :  { %2440 = vsyncpa [#allocation4], 1 }
 0x307   :  { %2441 = vsyncpa [#allocation7], 1 }
 0x308   :  { %2442 = vsyncpa [#allocation5], 1 }

</bundles_post_ra>
